<compile_context>
chip_gen: v7x
topology: tpu7x:2x2x1
jax: 0.10.0
libtpu: 0.0.40
codegen_flags: <defaults>
</compile_context>

<pallas_src>
import jax
import jax.numpy as jnp
from jax.experimental import pallas as pl
from jax.experimental.pallas import tpu as pltpu

B     = 32                      # molecules
A     = 8                       # atoms per molecule
D     = 3                       # xyz
DPAD  = 8                       # padded feature width fed to the MXU (xyz, 1.0, eps, 0, 0, 0)
H     = 32                      # true hidden width of the synthetic energy head
HW    = 128                     # lane-widened hidden width (cols >= H are zero)
BA    = B * A                   # 256 atom rows
PSLAB = 144                     # rows of the packed parameter slab (139 used, padded to 8x)

# position-slab column layout
_C_ONE = 3                      # constant 1.0 (bias feature)
_C_EPS = 4                      # per-atom reparameterization noise (molecule eps replicated)

# parameter-slab row layout
_R_W1F  = 0                     # rows [0, DPAD): augmented forward W1 (row 3 = b1, rows 4.. = 0)
_R_W1B  = DPAD                  # rows [8, 136): -W1^T, lane-widened; cols >= D are zero
_R_WMU  = DPAD + HW             # 136: wmu  (cols >= H zero)
_R_WSIG = DPAD + HW + 1         # 137: wsig (cols >= H zero)
_R_BIAS = DPAD + HW + 2         # 138: col 0 = bmu, col 1 = bsig


def energy_force_kernel(x_ref, p_ref, f_ref, d_ref):
    x = x_ref[...]                                                    # (BA, DPAD) f32

    w1_fwd = p_ref[_R_W1F:_R_W1F + DPAD, :]                          # (DPAD, HW)
    nw1T   = p_ref[_R_W1B:_R_W1B + HW, :]                            # (HW, HW)  = -W1^T widened
    wmu    = p_ref[_R_WMU:_R_WMU + 1, :]                             # (1, HW)
    wsig   = p_ref[_R_WSIG:_R_WSIG + 1, :]                           # (1, HW)
    bmu    = p_ref[_R_BIAS:_R_BIAS + 1, 0:1]                         # (1, 1)
    bsig   = p_ref[_R_BIAS:_R_BIAS + 1, 1:2]                         # (1, 1)

    # ---- forward: ONE bf16 MXU matmul; bias add folded in via the 1.0 column of x ------
    h = jnp.tanh(jnp.dot(x.astype(jnp.bfloat16), w1_fwd.astype(jnp.bfloat16),
                         preferred_element_type=jnp.float32))        # (BA, HW), cols >= H are 0

    # per-molecule pooling: reshape + sublane-group sum (no segment matmul)
    hs = jnp.sum(h.reshape(B, A, HW), axis=1)                        # (B, HW)

    # Gaussian energy distribution parameters
    z_mu = jnp.sum(hs * wmu,  axis=-1, keepdims=True) + bmu          # (B, 1)
    z_sg = jnp.sum(hs * wsig, axis=-1, keepdims=True) + bsig         # (B, 1)

    # stable softplus / sigmoid sharing ONE exp; divide -> EUP approx reciprocal
    e   = jnp.exp(-jnp.abs(z_sg))
    r   = pl.reciprocal(1.0 + e, approx=True)
    # log(1+e) with e = exp(-|z|) <= 1 differs from log1p(e) by < 6e-8 absolute; negligible
    # at this tolerance.  TODO(synk): switch to jnp.log1p if tolerances tighten.
    std = jnp.maximum(z_sg, 0.0) + jnp.log(1.0 + e)                  # softplus(z_sg)
    sig = jnp.where(z_sg >= 0.0, r, e * r)                           # sigmoid(z_sg)

    # ---- backward: forces = -d/dpos sum_m (mu_m + eps_m * softplus(z_m)) ---------------
    eps_rows = x[:, _C_EPS:_C_EPS + 1]                               # (BA, 1), already per-atom
    sig_rows = jnp.broadcast_to(sig[:, None, :], (B, A, 1)).reshape(BA, 1)   # single sublane bcast
    coef     = wmu + (eps_rows * sig_rows) * wsig                    # (BA, HW)
    grad_h   = (1.0 - h * h) * coef                                  # tanh'

    # plain NN bf16 matmul against pre-negated -W1^T: the result IS the force output slab;
    # padded columns (>= D) are exactly zero because those slab columns are zero.
    f_ref[...] = jnp.dot(grad_h.astype(jnp.bfloat16), nw1T.astype(jnp.bfloat16),
                         preferred_element_type=jnp.float32)         # (BA, HW)

    # tiny per-molecule distribution output (no replication over the A atom rows)
    d_ref[...] = jnp.concatenate([z_mu, std], axis=-1)               # (B, 2)


def pack_params(w1, b1, wmu, wsig, bmu, bsig):
    """Pack all head parameters into a single lane-dense (PSLAB, 128) f32 slab."""
    w1a = jnp.zeros((DPAD, HW), jnp.float32)
    w1a = w1a.at[:D, :H].set(w1.astype(jnp.float32))
    w1a = w1a.at[_C_ONE, :H].set(b1.reshape(H).astype(jnp.float32))  # bias folded into row 3
    # row _C_EPS stays zero so the hidden features never depend on eps.

    w1bT = jnp.zeros((HW, HW), jnp.float32)
    w1bT = w1bT.at[:H, :D].set(-w1.T.astype(jnp.float32))            # pre-negated, pre-transposed

    wmu_w  = jnp.zeros((1, HW), jnp.float32).at[0, :H].set(wmu.reshape(H).astype(jnp.float32))
    wsig_w = jnp.zeros((1, HW), jnp.float32).at[0, :H].set(wsig.reshape(H).astype(jnp.float32))
    bias_w = jnp.zeros((1, HW), jnp.float32).at[0, 0].set(bmu).at[0, 1].set(bsig)
    pad    = jnp.zeros((PSLAB - (DPAD + HW + 3), HW), jnp.float32)
    return jnp.concatenate([w1a, w1bT, wmu_w, wsig_w, bias_w, pad], axis=0)


def force_model_forward(pos, pslab, eps):
    """pos: [B, A, 3] f32, eps: [B, 1] f32.  Returns ((mean, stddev), forces [B, A, 3])."""
    # host-side prep (cheap XLA ops): aligned (BA, 8) position slab with bias column and eps
    pos_flat = pos.reshape(BA, D).astype(jnp.float32)
    ones     = jnp.ones((BA, 1), jnp.float32)
    eps_rows = jnp.broadcast_to(eps.astype(jnp.float32)[:, None, :], (B, A, 1)).reshape(BA, 1)
    zeros    = jnp.zeros((BA, DPAD - (D + 2)), jnp.float32)
    x = jnp.concatenate([pos_flat, ones, eps_rows, zeros], axis=-1)   # (BA, DPAD)

    force_slab, dist = pl.pallas_call(
        energy_force_kernel,
        out_shape=(jax.ShapeDtypeStruct((BA, HW), jnp.float32),
                   jax.ShapeDtypeStruct((B, 2), jnp.float32)),
        grid=(1,),                                                    # single step: overhead-bound
        in_specs=[
            pl.BlockSpec((BA, DPAD), lambda i: (0, 0)),               # padded atom positions
            pl.BlockSpec((PSLAB, HW), lambda i: (0, 0)),              # packed parameter slab
        ],
        out_specs=(
            pl.BlockSpec((BA, HW), lambda i: (0, 0)),                 # lane-dense force slab
            pl.BlockSpec((B, 2), lambda i: (0, 0)),                   # per-molecule (mean, std)
        ),
        compiler_params=pltpu.CompilerParams(dimension_semantics=("arbitrary",)),
    )(x, pslab)

    forces = force_slab[:, :D].reshape(B, A, D)
    mean   = dist[:, 0:1]
    stddev = dist[:, 1:2]
    return (mean, stddev), forces


if __name__ == "__main__":
    key = jax.random.PRNGKey(0)
    k_pos, k_eps, k_w1, k_wmu, k_wsig = jax.random.split(key, 5)

    pos = jax.random.normal(k_pos, (B, A, D), jnp.float32)
    eps = jax.random.normal(k_eps, (B, 1), jnp.float32)        # reparameterization noise

    # deterministic synthetic energy-head parameters
    w1   = 0.3 * jax.random.normal(k_w1, (D, H), jnp.float32)
    b1   = jnp.zeros((1, H), jnp.float32)
    wmu  = 0.2 * jax.random.normal(k_wmu, (1, H), jnp.float32)
    wsig = 0.1 * jax.random.normal(k_wsig, (1, H), jnp.float32)
    bmu, bsig = 0.0, -1.0
    pslab = pack_params(w1, b1, wmu, wsig, bmu, bsig)

    (mean, std), forces = force_model_forward(pos, pslab, eps)
    jax.block_until_ready((mean, std, forces))

    # --- pure-JAX reference: mirrors torch.autograd.grad on the rsample sum ---
    def _model(p):
        h  = jnp.tanh(p.reshape(BA, D) @ w1 + b1)              # (BA, H)
        hs = h.reshape(B, A, H).sum(axis=1)                    # (B, H)
        mu = jnp.sum(hs * wmu, axis=-1, keepdims=True) + bmu
        z  = jnp.sum(hs * wsig, axis=-1, keepdims=True) + bsig
        return mu, jax.nn.softplus(z)

    def sample_sum(p):
        mu, s = _model(p)
        return jnp.sum(mu + eps * s)

    mu_ref, std_ref = _model(pos)
    forces_ref = -jax.grad(sample_sum)(pos)

    assert jnp.allclose(mean, mu_ref, atol=5e-2, rtol=5e-2)
    assert jnp.allclose(std, std_ref, atol=5e-2, rtol=5e-2)
    assert jnp.allclose(forces, forces_ref, atol=5e-2, rtol=5e-2)
    print("KERNEL_OK")
</pallas_src>

<mosaic_0001>
module attributes {stable_mosaic.version = 11 : i64} {
  func.func @energy_force_kernel(%arg0: i32, %arg1: memref<256x8xf32, #tpu.memory_space<vmem>>, %arg2: memref<144x128xf32, #tpu.memory_space<vmem>>, %arg3: memref<256x128xf32, #tpu.memory_space<vmem>>, %arg4: memref<32x2xf32, #tpu.memory_space<vmem>>) attributes {dimension_semantics = [#tpu.dimension_semantics<arbitrary>], iteration_bounds = array<i64: 1>, scalar_prefetch = 0 : i64, scratch_operands = 0 : i64, tpu.core_type = #tpu.core_type<tc>, window_params = [{pipeline_mode = #tpu.pipeline_mode<synchronous>, transform_indices = @transform_0, window_bounds = array<i64: 256, 8>}, {pipeline_mode = #tpu.pipeline_mode<synchronous>, transform_indices = @transform_1, window_bounds = array<i64: 144, 128>}, {pipeline_mode = #tpu.pipeline_mode<synchronous>, transform_indices = @transform_2, window_bounds = array<i64: 256, 128>}, {pipeline_mode = #tpu.pipeline_mode<synchronous>, transform_indices = @transform_3, window_bounds = array<i64: 32, 2>}]} {
    %c0 = arith.constant 0 : index
    %c0_0 = arith.constant 0 : index
    %0 = vector.load %arg1[%c0, %c0_0] : memref<256x8xf32, #tpu.memory_space<vmem>>, vector<256x8xf32>
    %c0_1 = arith.constant 0 : index
    %c0_2 = arith.constant 0 : index
    %1 = vector.load %arg2[%c0_1, %c0_2] : memref<144x128xf32, #tpu.memory_space<vmem>>, vector<8x128xf32>
    %c8 = arith.constant 8 : index
    %c0_3 = arith.constant 0 : index
    %2 = vector.load %arg2[%c8, %c0_3] : memref<144x128xf32, #tpu.memory_space<vmem>>, vector<128x128xf32>
    %c136 = arith.constant 136 : index
    %c0_4 = arith.constant 0 : index
    %3 = vector.load %arg2[%c136, %c0_4] : memref<144x128xf32, #tpu.memory_space<vmem>>, vector<1x128xf32>
    %c137 = arith.constant 137 : index
    %c0_5 = arith.constant 0 : index
    %4 = vector.load %arg2[%c137, %c0_5] : memref<144x128xf32, #tpu.memory_space<vmem>>, vector<1x128xf32>
    %c138 = arith.constant 138 : index
    %c0_6 = arith.constant 0 : index
    %5 = vector.load %arg2[%c138, %c0_6] : memref<144x128xf32, #tpu.memory_space<vmem>>, vector<1x1xf32>
    %c138_7 = arith.constant 138 : index
    %c1 = arith.constant 1 : index
    %6 = vector.load %arg2[%c138_7, %c1] : memref<144x128xf32, #tpu.memory_space<vmem>>, vector<1x1xf32>
    %7 = arith.truncf %0 : vector<256x8xf32> to vector<256x8xbf16>
    %8 = arith.truncf %1 : vector<8x128xf32> to vector<8x128xbf16>
    %cst = arith.constant dense<0.000000e+00> : vector<256x128xf32>
    %9 = tpu.matmul %7, %8, %cst {dimension_numbers = #tpu.dot_dimension_numbers<[1], [0], [0], [1], [0, 0, 1, 1], [], []>} : vector<256x8xbf16>, vector<8x128xbf16>, vector<256x128xf32> -> vector<256x128xf32>
    %10 = math.tanh %9 : vector<256x128xf32>
    %11 = vector.shape_cast %10 : vector<256x128xf32> to vector<32x8x128xf32>
    %cst_8 = arith.constant dense<0.000000e+00> : vector<32x128xf32>
    %12 = vector.multi_reduction <add>, %11, %cst_8 [1] : vector<32x8x128xf32> to vector<32x128xf32>
    %13 = vector.broadcast %3 : vector<1x128xf32> to vector<32x128xf32>
    %14 = arith.mulf %12, %13 : vector<32x128xf32>
    %cst_9 = arith.constant dense<0.000000e+00> : vector<32xf32>
    %15 = vector.multi_reduction <add>, %14, %cst_9 [1] : vector<32x128xf32> to vector<32xf32>
    %16 = vector.shape_cast %15 : vector<32xf32> to vector<32x1xf32>
    %17 = vector.broadcast %5 : vector<1x1xf32> to vector<32x1xf32>
    %18 = arith.addf %16, %17 : vector<32x1xf32>
    %19 = vector.broadcast %4 : vector<1x128xf32> to vector<32x128xf32>
    %20 = arith.mulf %12, %19 : vector<32x128xf32>
    %cst_10 = arith.constant dense<0.000000e+00> : vector<32xf32>
    %21 = vector.multi_reduction <add>, %20, %cst_10 [1] : vector<32x128xf32> to vector<32xf32>
    %22 = vector.shape_cast %21 : vector<32xf32> to vector<32x1xf32>
    %23 = vector.broadcast %6 : vector<1x1xf32> to vector<32x1xf32>
    %24 = arith.addf %22, %23 : vector<32x1xf32>
    %25 = math.absf %24 : vector<32x1xf32>
    %cst_11 = arith.constant 0.000000e+00 : f32
    %26 = vector.broadcast %cst_11 : f32 to vector<32x1xf32>
    %27 = arith.subf %26, %25 : vector<32x1xf32>
    %28 = math.exp %27 : vector<32x1xf32>
    %cst_12 = arith.constant 1.000000e+00 : f32
    %29 = vector.broadcast %cst_12 : f32 to vector<32x1xf32>
    %30 = arith.addf %29, %28 : vector<32x1xf32>
    %31 = tpu.reciprocal %30 {approx = true} : vector<32x1xf32> -> vector<32x1xf32>
    %cst_13 = arith.constant 0.000000e+00 : f32
    %32 = vector.broadcast %cst_13 : f32 to vector<32x1xf32>
    %33 = arith.maximumf %24, %32 : vector<32x1xf32>
    %cst_14 = arith.constant 1.000000e+00 : f32
    %34 = vector.broadcast %cst_14 : f32 to vector<32x1xf32>
    %35 = arith.addf %34, %28 : vector<32x1xf32>
    %36 = math.log %35 : vector<32x1xf32>
    %37 = arith.addf %33, %36 : vector<32x1xf32>
    %cst_15 = arith.constant 0.000000e+00 : f32
    %38 = vector.broadcast %cst_15 : f32 to vector<32x1xf32>
    %39 = arith.cmpf oge, %24, %38 : vector<32x1xf32>
    %40 = arith.mulf %28, %31 : vector<32x1xf32>
    %41 = arith.select %39, %31, %40 : vector<32x1xi1>, vector<32x1xf32>
    %42 = vector.extract_strided_slice %0 {offsets = [0, 4], sizes = [256, 1], strides = [1, 1]} : vector<256x8xf32> to vector<256x1xf32>
    %43 = vector.shape_cast %41 : vector<32x1xf32> to vector<32x1x1xf32>
    %44 = vector.shape_cast %43 : vector<32x1x1xf32> to vector<32x1x1xf32>
    %45 = vector.broadcast %44 : vector<32x1x1xf32> to vector<32x8x1xf32>
    %46 = vector.shape_cast %45 : vector<32x8x1xf32> to vector<256x1xf32>
    %47 = arith.mulf %42, %46 : vector<256x1xf32>
    %48 = vector.broadcast %47 : vector<256x1xf32> to vector<256x128xf32>
    %49 = vector.broadcast %4 : vector<1x128xf32> to vector<256x128xf32>
    %50 = arith.mulf %48, %49 : vector<256x128xf32>
    %51 = vector.broadcast %3 : vector<1x128xf32> to vector<256x128xf32>
    %52 = arith.addf %51, %50 : vector<256x128xf32>
    %53 = arith.mulf %10, %10 : vector<256x128xf32>
    %cst_16 = arith.constant 1.000000e+00 : f32
    %54 = vector.broadcast %cst_16 : f32 to vector<256x128xf32>
    %55 = arith.subf %54, %53 : vector<256x128xf32>
    %56 = arith.mulf %55, %52 : vector<256x128xf32>
    %57 = arith.truncf %56 : vector<256x128xf32> to vector<256x128xbf16>
    %58 = arith.truncf %2 : vector<128x128xf32> to vector<128x128xbf16>
    %cst_17 = arith.constant dense<0.000000e+00> : vector<256x128xf32>
    %59 = tpu.matmul %57, %58, %cst_17 {dimension_numbers = #tpu.dot_dimension_numbers<[1], [0], [0], [1], [0, 0, 1, 1], [], []>} : vector<256x128xbf16>, vector<128x128xbf16>, vector<256x128xf32> -> vector<256x128xf32>
    %c0_18 = arith.constant 0 : index
    %c0_19 = arith.constant 0 : index
    %60 = vector.load %arg3[%c0_18, %c0_19] : memref<256x128xf32, #tpu.memory_space<vmem>>, vector<256x128xf32>
    tpu.vector_store %arg3[%c0_18, %c0_19], %59 {strides = array<i32>} : memref<256x128xf32, #tpu.memory_space<vmem>>, vector<256x128xf32>,
    %61 = tpu.concatenate %18, %37 in 1 : vector<32x1xf32>, vector<32x1xf32> -> vector<32x2xf32>
    %c0_20 = arith.constant 0 : index
    %c0_21 = arith.constant 0 : index
    %62 = vector.load %arg4[%c0_20, %c0_21] : memref<32x2xf32, #tpu.memory_space<vmem>>, vector<32x2xf32>
    tpu.vector_store %arg4[%c0_20, %c0_21], %61 {strides = array<i32>} : memref<32x2xf32, #tpu.memory_space<vmem>>, vector<32x2xf32>,
    return
  }
  func.func @transform_0(%arg0: i32) -> (i32, i32) {
    %c0_i32 = arith.constant 0 : i32
    %c0_i32_0 = arith.constant 0 : i32
    %c0_i32_1 = arith.constant 0 : i32
    return %c0_i32, %c0_i32_0 : i32, i32
  }
  func.func @transform_1(%arg0: i32) -> (i32, i32) {
    %c0_i32 = arith.constant 0 : i32
    %c0_i32_0 = arith.constant 0 : i32
    %c0_i32_1 = arith.constant 0 : i32
    return %c0_i32, %c0_i32_0 : i32, i32
  }
  func.func @transform_2(%arg0: i32) -> (i32, i32) {
    %c0_i32 = arith.constant 0 : i32
    %c0_i32_0 = arith.constant 0 : i32
    %c0_i32_1 = arith.constant 0 : i32
    return %c0_i32, %c0_i32_0 : i32, i32
  }
  func.func @transform_3(%arg0: i32) -> (i32, i32) {
    %c0_i32 = arith.constant 0 : i32
    %c0_i32_0 = arith.constant 0 : i32
    %c0_i32_1 = arith.constant 0 : i32
    return %c0_i32, %c0_i32_0 : i32, i32
  }
}

</mosaic_0001>

<bundles_post_ra>
// kernel: tpu_custom_call.1
= control target key start
LH: loop header
LB: loop body
LE: loop exit
PB: predicated region body
PF: predicated region fallthrough
CT: control target
= control target key end

     0   :  { %vm133_vm0 = vcmask 1043456   ;;  %vm84_vm1 = vcmask 64512   ;;  %s3175_s0 = inlined_call_operand.vmem [shape: f32[256,8], index: 0, kind: input, shape index: {}]   ;;  %s3176_s1 = inlined_call_operand.vmem [shape: f32[144,128], index: 1, kind: input, shape index: {}]   ;;  %s3177_s2 = inlined_call_operand.hbm [shape: f32[256,128], index: 2, kind: output, shape index: {0}]   ;;  %s3178_s3 = inlined_call_operand.vmem [shape: f32[32,2], index: 3, kind: output, shape index: {1}]  }
   0x1   :  { %v47_v0 = vld [vmem:[%s3176_s1] sm:$0xff]  ;;  %v16_v2 = vld [vmem:[%s3175_s0 + $0x8] sm:$0xff]  ;;  %v17_v5 = vld [vmem:[%s3175_s0 + $0x10] sm:$0xff] }
   0x2   :  { %v15_v1 = vld [vmem:[%s3175_s0] sm:$0xff]  ;;  %v83_v3 = vpack.c.bf16 %v47_v0, %v47_v0  ;;  %v18_v6 = vld [vmem:[%s3175_s0 + $0x18] sm:$0xff]  ;;  %v20_v8 = vld [vmem:[%s3175_s0 + $0x28] sm:$0xff] }
   0x3   :  { %v67_v4 = vpack.c.bf16 %v16_v2, %v15_v1  ;;  %v19_v7 = vld [vmem:[%s3175_s0 + $0x20] sm:$0xff]  ;;  %v68_v10 = vpack.c.bf16 %v18_v6, %v17_v5  ;;  %v21_v12 = vld [vmem:[%s3175_s0 + $0x30] sm:$0xff]  ;;  %v22_v13 = vld [vmem:[%s3175_s0 + $0x38] sm:$0xff] }
   0x4   :  { %2046 = vmatprep.subr.msk.bf16.mxu0 %vm133_vm0, %v83_v3  ;;  %v135_v9 = vsel %vm133_vm0, %v83_v3, 0  ;;  %v69_v11 = vpack.c.bf16 %v20_v8, %v19_v7  ;;  %v23_v14 = vld [vmem:[%s3175_s0 + $0x40] sm:$0xff]  ;;  %v24_v15 = vld [vmem:[%s3175_s0 + $0x48] sm:$0xff]  ;;  %v70_v16 = vpack.c.bf16 %v22_v13, %v21_v12 }
   0x5   :  { %1950 = vmatprep.mubr.msk.bf16.mxu0 %vm84_vm1, %v67_v4  ;;  %1949 = vmatpush3.bf16.msra.mxu0 %v135_v9 }
   0x8   :  { %1951 = vmatmul.mubr.msk.bf16.vlgmr.msra.gmra.mrb[0].mxu0 %vm84_vm1, %v68_v10 }
   0x9   :  { %1954 = vmatprep.mubr.msk.bf16.mxu0 %vm84_vm1, %v69_v11 }
   0xa   :  { %9 = vsyncpa [#allocation3], 0  ;;  %v71_v17 = vpack.c.bf16 %v24_v15, %v23_v14  ;;  %v25_v18 = vld [vmem:[%s3175_s0 + $0x50] sm:$0xff]  ;;  %v26_v19 = vld [vmem:[%s3175_s0 + $0x58] sm:$0xff]  ;;  %vm591_vm2 = vcmask 1041409   ;;  %vm594_vm3 = vcmask 1042434  }
   0xb   :  { %v27_v20 = vld [vmem:[%s3175_s0 + $0x60] sm:$0xff]  ;;  %v28_v21 = vld [vmem:[%s3175_s0 + $0x68] sm:$0xff]  ;;  %v72_v22 = vpack.c.bf16 %v26_v19, %v25_v18  ;;  %v29_v24 = vld [vmem:[%s3175_s0 + $0x70] sm:$0xff]  ;;  %vm597_vm4 = vcmask 1043459   ;;  %vm600_vm5 = vcmask 1044484   ;;  %vm603_vm6 = vcmask 1045509  }
   0xc   :  { %v73_v23 = vpack.c.bf16 %v28_v21, %v27_v20  ;;  %v30_v25 = vld [vmem:[%s3175_s0 + $0x78] sm:$0xff]  ;;  %v31_v26 = vld [vmem:[%s3175_s0 + $0x80] sm:$0xff]  ;;  %v32_v27 = vld [vmem:[%s3175_s0 + $0x88] sm:$0xff]  ;;  %vm606_vm7 = vcmask 1046534   ;;  %vm609_vm8 = vcmask 1047559   ;;  %s2204_s30 = smov 3  }
   0xd   :  { %v74_v28 = vpack.c.bf16 %v30_v25, %v29_v24  ;;  %v75_v29 = vpack.c.bf16 %v32_v27, %v31_v26  ;;  %v33_v30 = vld [vmem:[%s3175_s0 + $0x90] sm:$0xff]  ;;  %v34_v31 = vld [vmem:[%s3175_s0 + $0x98] sm:$0xff]  ;;  %v35_v32 = vld [vmem:[%s3175_s0 + $0xa0] sm:$0xff]  ;;  %vm1858_vm13 = vcmask 7168   ;;  %vm1863_vm14 = vcmask 15360  }
   0xe   :  { %v36_v33 = vld [vmem:[%s3175_s0 + $0xa8] sm:$0xff]  ;;  %v76_v34 = vpack.c.bf16 %v34_v31, %v33_v30  ;;  %v37_v36 = vld [vmem:[%s3175_s0 + $0xb0] sm:$0xff]  ;;  %v38_v37 = vld [vmem:[%s3175_s0 + $0xb8] sm:$0xff] }
   0xf   :  { %v77_v35 = vpack.c.bf16 %v36_v33, %v35_v32  ;;  %v39_v38 = vld [vmem:[%s3175_s0 + $0xc0] sm:$0xff]  ;;  %v40_v39 = vld [vmem:[%s3175_s0 + $0xc8] sm:$0xff]  ;;  %v78_v40 = vpack.c.bf16 %v38_v37, %v37_v36  ;;  %v41_v42 = vld [vmem:[%s3175_s0 + $0xd0] sm:$0xff] }
  0x10   :  { %1955 = vmatmul.mubr.msk.bf16.gmra.mrb[4].mxu0 %vm84_vm1, %v70_v16  ;;  %v79_v41 = vpack.c.bf16 %v40_v39, %v39_v38  ;;  %v42_v43 = vld [vmem:[%s3175_s0 + $0xd8] sm:$0xff]  ;;  %v43_v44 = vld [vmem:[%s3175_s0 + $0xe0] sm:$0xff]  ;;  %v44_v45 = vld [vmem:[%s3175_s0 + $0xe8] sm:$0xff] }
  0x11   :  { %1958 = vmatprep.mubr.msk.bf16.mxu0 %vm84_vm1, %v71_v17  ;;  %v80_v46 = vpack.c.bf16 %v42_v43, %v41_v42  ;;  %v81_v47 = vpack.c.bf16 %v44_v45, %v43_v44  ;;  %v45_v48 = vld [vmem:[%s3175_s0 + $0xf0] sm:$0xff]  ;;  %v46_v49 = vld [vmem:[%s3175_s0 + $0xf8] sm:$0xff] }
  0x12   :  { %v82_v50 = vpack.c.bf16 %v46_v49, %v45_v48 }
  0x18   :  { %1959 = vmatmul.mubr.msk.bf16.gmra.mrb[8].mxu0 %vm84_vm1, %v72_v22 }
  0x19   :  { %1962 = vmatprep.mubr.msk.bf16.mxu0 %vm84_vm1, %v73_v23  ;;  %v2369_v23 = vld [vmem:[%s3176_s1 + $0x89] ss:$0 sm:$0xff] }
  0x20   :  { %1963 = vmatmul.mubr.msk.bf16.gmra.mrb[12].mxu0 %vm84_vm1, %v74_v28 }
  0x21   :  { %1966 = vmatprep.mubr.msk.bf16.mxu0 %vm84_vm1, %v75_v29 }
  0x28   :  { %1967 = vmatmul.mubr.msk.bf16.gmra.mrb[16].mxu0 %vm84_vm1, %v76_v34 }
  0x29   :  { %1970 = vmatprep.mubr.msk.bf16.mxu0 %vm84_vm1, %v77_v35 }
  0x30   :  { %1971 = vmatmul.mubr.msk.bf16.gmra.mrb[20].mxu0 %vm84_vm1, %v78_v40 }
  0x31   :  { %1974 = vmatprep.mubr.msk.bf16.mxu0 %vm84_vm1, %v79_v41 }
  0x38   :  { %1975 = vmatmul.mubr.msk.bf16.gmra.mrb[24].mxu0 %vm84_vm1, %v80_v46 }
  0x39   :  { %1978 = vmatprep.mubr.msk.bf16.mxu0 %vm84_vm1, %v81_v47 }
  0x40   :  { %1979 = vmatmul.mubr.msk.bf16.gmra.mrb[28].mxu0 %vm84_vm1, %v82_v50 }
  0xdb   :  { %v1952_v51 = vpop.f32.mrb[0].mxu0 }
  0xdc   :  { %2055 = vtanh.f32 %v1952_v51  ;;  %v171_v52 = vpop.f32.mrb[1].mxu0 }
  0xdd   :  { %2057 = vtanh.f32 %v171_v52  ;;  %v1953_v53 = vpop.f32.mrb[2].mxu0 }
  0xde   :  { %2059 = vtanh.f32 %v1953_v53  ;;  %v174_v54 = vpop.f32.mrb[3].mxu0 }
  0xdf   :  { %2061 = vtanh.f32 %v174_v54 }
  0xe3   :  { %v1956_v55 = vpop.f32.mrb[4].mxu0 }
  0xe4   :  { %2063 = vtanh.f32 %v1956_v55  ;;  %v187_v56 = vpop.f32.mrb[5].mxu0 }
  0xe5   :  { %2065 = vtanh.f32 %v187_v56  ;;  %v1957_v57 = vpop.f32.mrb[6].mxu0 }
  0xe6   :  { %v2343_v58 = vpop.eup %2055  ;;  %2067 = vtanh.f32 %v1957_v57  ;;  %v190_v59 = vpop.f32.mrb[7].mxu0 }
  0xe7   :  { %v2345_v60 = vpop.eup %2057  ;;  %2069 = vtanh.f32 %v190_v59  ;;  %v342_v61 = vrot.slane %v2343_v58, 4 }
  0xe8   :  { %v2348_v62 = vpop.eup %2059  ;;  %v330_v63 = vrot.slane %v2345_v60, 4 }
  0xe9   :  { %v2351_v0 = vpop.eup %2061  ;;  %v343_v1 = vadd.f32 %v2343_v58, %v342_v61  ;;  %v348_v2 = vrot.slane %v2348_v62, 4 }
  0xea   :  { %v336_v3 = vrot.slane %v2351_v0, 4  ;;  %v331_v4 = vadd.f32 %v2345_v60, %v330_v63 }
  0xeb   :  { %v1960_v5 = vpop.f32.mrb[8].mxu0  ;;  %v344_v6 = vrot.slane %v343_v1, 2  ;;  %v349_v7 = vadd.f32 %v2348_v62, %v348_v2 }
  0xec   :  { %v203_v8 = vpop.f32.mrb[9].mxu0  ;;  %v332_v9 = vrot.slane %v331_v4, 2  ;;  %v337_v10 = vadd.f32 %v2351_v0, %v336_v3 }
  0xed   :  { %2071 = vtanh.f32 %v203_v8  ;;  %v1961_v11 = vpop.f32.mrb[10].mxu0  ;;  %v345_v12 = vadd.f32 %v344_v6, %v343_v1  ;;  %v350_v13 = vrot.slane %v349_v7, 2 }
  0xee   :  { %v2359_v14 = vpop.eup %2063  ;;  %2073 = vtanh.f32 %v1960_v5  ;;  %v206_v15 = vpop.f32.mrb[11].mxu0  ;;  %v333_v16 = vadd.f32 %v332_v9, %v331_v4  ;;  %v338_v17 = vrot.slane %v337_v10, 2 }
  0xef   :  { %v2361_v18 = vpop.eup %2065  ;;  %2075 = vtanh.f32 %v206_v15  ;;  %v346_v19 = vrot.slane %v345_v12, 1  ;;  %v351_v20 = vadd.f32 %v350_v13, %v349_v7  ;;  %v366_v21 = vrot.slane %v2359_v14, 4 }
  0xf0   :  { %v2364_v22 = vpop.eup %2067  ;;  %2077 = vtanh.f32 %v1961_v11  ;;  %v334_v24 = vrot.slane %v333_v16, 1  ;;  %v339_v25 = vadd.f32 %v338_v17, %v337_v10  ;;  %v354_v26 = vrot.slane %v2361_v18, 4 }
  0xf1   :  { %v2372_v27 = vpop.eup %2069  ;;  %v2374_v28 = vadd.f32 %v346_v19, %v345_v12  ;;  %v352_v29 = vrot.slane %v351_v20, 1  ;;  %v367_v30 = vadd.f32 %v2359_v14, %v366_v21  ;;  %v372_v31 = vrot.slane %v2364_v22, 4 }
  0xf2   :  { %v2378_v32 = vadd.f32 %v334_v24, %v333_v16  ;;  %v340_v33 = vrot.slane %v339_v25, 1  ;;  %v355_v34 = vadd.f32 %v2361_v18, %v354_v26  ;;  %v360_v35 = vrot.slane %v2372_v27, 4 }
  0xf3   :  { %v1964_v36 = vpop.f32.mrb[12].mxu0  ;;  %v2382_v37 = vadd.f32 %v352_v29, %v351_v20  ;;  %v368_v38 = vrot.slane %v367_v30, 2  ;;  %v373_v39 = vadd.f32 %v2364_v22, %v372_v31  ;;  %v679_v40 = vmul.f32 %v2369_v23, %v2374_v28 }
  0xf4   :  { %2079 = vtanh.f32 %v1964_v36  ;;  %v219_v41 = vpop.f32.mrb[13].mxu0  ;;  %v2387_v42 = vadd.f32 %v340_v33, %v339_v25  ;;  %v356_v43 = vrot.slane %v355_v34, 2  ;;  %v361_v44 = vadd.f32 %v2372_v27, %v360_v35 }
  0xf5   :  { %2081 = vtanh.f32 %v219_v41  ;;  %v1965_v45 = vpop.f32.mrb[14].mxu0  ;;  %v369_v46 = vadd.f32 %v368_v38, %v367_v30  ;;  %v374_v47 = vrot.slane %v373_v39, 2  ;;  %v677_v48 = vmul.f32 %v2369_v23, %v2378_v32 }
  0xf6   :  { %2083 = vtanh.f32 %v1965_v45  ;;  %v222_v49 = vpop.f32.mrb[15].mxu0  ;;  %v357_v50 = vadd.f32 %v356_v43, %v355_v34  ;;  %v362_v51 = vrot.slane %v361_v44, 2  ;;  %v678_v52 = vmul.f32 %v2369_v23, %v2387_v42 }
  0xf7   :  { %v2394_v53 = vpop.eup %2071  ;;  %2085 = vtanh.f32 %v222_v49  ;;  %v370_v54 = vrot.slane %v369_v46, 1  ;;  %v375_v55 = vadd.f32 %v374_v47, %v373_v39  ;;  %v680_v56 = vmul.f32 %v2369_v23, %v2382_v37 }
  0xf8   :  { %v2398_v57 = vpop.eup %2073  ;;  %v378_v59 = vrot.slane %v2394_v53, 4  ;;  %v358_v61 = vrot.slane %v357_v50, 1  ;;  %v363_v63 = vadd.f32 %v362_v51, %v361_v44  ;;  %v741_v1 = vrot.slane %v678_v52, 7 }
  0xf9   :  { %3199 = vst [vmem:[#allocation5_spill] sm:$0xff] %v2398_v57  ;;  %v2401_v2 = vpop.eup %2075  ;;  %v2403_v3 = vadd.f32 %v370_v54, %v369_v46  ;;  %v376_v4 = vrot.slane %v375_v55, 1  ;;  %v743_v5 = vrot.slane %v679_v40, 6  ;;  %v745_v6 = vrot.slane %v680_v56, 5 }
  0xfa   :  { %v2405_v7 = vpop.eup %2077  ;;  %v384_v8 = vrot.slane %v2401_v2, 4  ;;  %v2408_v9 = vadd.f32 %v358_v61, %v357_v50  ;;  %v364_v10 = vrot.slane %v363_v63, 1  ;;  %v742_v11 = vsel %vm591_vm2, %v741_v1, %v677_v48 }
  0xfb   :  { %3200 = vst [vmem:[#allocation6_spill] sm:$0xff] %v2405_v7  ;;  %v1968_v12 = vpop.f32.mrb[16].mxu0  ;;  %v2411_v13 = vadd.f32 %v376_v4, %v375_v55  ;;  %v683_v15 = vmul.f32 %v2369_v23, %v2403_v3  ;;  %v744_v16 = vsel %vm594_vm3, %v743_v5, %v742_v11  ;;  %v379_v17 = vadd.f32 %v2394_v53, %v378_v59 }
  0xfc   :  { %2087 = vtanh.f32 %v1968_v12  ;;  %v235_v19 = vpop.f32.mrb[17].mxu0  ;;  %v2417_v20 = vadd.f32 %v364_v10, %v363_v63  ;;  %v681_v21 = vmul.f32 %v2369_v23, %v2408_v9  ;;  %v746_v24 = vsel %vm597_vm4, %v745_v6, %v744_v16 }
  0xfd   :  { %2089 = vtanh.f32 %v235_v19  ;;  %v1969_v25 = vpop.f32.mrb[18].mxu0  ;;  %v684_v26 = vmul.f32 %v2369_v23, %v2411_v13  ;;  %v751_v29 = vrot.slane %v683_v15, 2  ;;  %v380_v30 = vrot.slane %v379_v17, 2 }
  0xfe   :  { %v2424_v31 = vpop.eup %2079  ;;  %2091 = vtanh.f32 %v1969_v25  ;;  %v238_v33 = vpop.f32.mrb[19].mxu0  ;;  %v682_v34 = vmul.f32 %v2369_v23, %v2417_v20  ;;  %v747_v35 = vrot.slane %v681_v21, 4  ;;  %v385_v36 = vadd.f32 %v2401_v2, %v384_v8 }
  0xff   :  { %3201 = vst [vmem:[#allocation7_spill] sm:$0xff] %v2424_v31  ;;  %v2429_v38 = vpop.eup %2081  ;;  %2093 = vtanh.f32 %v238_v33  ;;  %v753_v39 = vrot.slane %v684_v26, 1  ;;  %v381_v40 = vadd.f32 %v380_v30, %v379_v17  ;;  %v390_v41 = vrot.slane %v2398_v57, 4 }
 0x100   :  { %3202 = vst [vmem:[#allocation8_spill] sm:$0xff] %v2429_v38  ;;  %v2432_v43 = vpop.eup %2083  ;;  %v748_v44 = vsel %vm600_vm5, %v747_v35, %v746_v24  ;;  %v749_v45 = vrot.slane %v682_v34, 3  ;;  %v386_v46 = vrot.slane %v385_v36, 2  ;;  %v396_v47 = vrot.slane %v2405_v7, 4 }
 0x101   :  { %3203 = vst [vmem:[#allocation9_spill] sm:$0xff] %v2432_v43  ;;  %v2436_v48 = vpop.eup %2085  ;;  %v382_v49 = vrot.slane %v381_v40, 1  ;;  %v391_v50 = vadd.f32 %v2398_v57, %v390_v41  ;;  %v402_v51 = vrot.slane %v2429_v38, 4  ;;  %v414_v52 = vrot.slane %v2424_v31, 4 }
 0x102   :  { %3204 = vst [vmem:[#allocation10_spill] sm:$0xff] %v2436_v48  ;;  %v750_v54 = vsel %vm603_vm6, %v749_v45, %v748_v44  ;;  %v387_v55 = vadd.f32 %v386_v46, %v385_v36  ;;  %v397_v56 = vadd.f32 %v2405_v7, %v396_v47  ;;  %v408_v59 = vrot.slane %v2436_v48, 4 }
 0x103   :  { %v1972_v61 = vpop.f32.mrb[20].mxu0  ;;  %v752_v63 = vsel %vm606_vm7, %v751_v29, %v750_v54  ;;  %v2445_v1 = vadd.f32 %v382_v49, %v381_v40  ;;  %v392_v4 = vrot.slane %v391_v50, 2  ;;  %v403_v5 = vadd.f32 %v2429_v38, %v402_v51 }
 0x104   :  { %2095 = vtanh.f32 %v1972_v61  ;;  %v251_v6 = vpop.f32.mrb[21].mxu0  ;;  %v754_v8 = vsel %vm609_vm8, %v753_v39, %v752_v63  ;;  %v388_v10 = vrot.slane %v387_v55, 1  ;;  %v398_v11 = vrot.slane %v397_v56, 2 }
 0x105   :  { %2097 = vtanh.f32 %v251_v6  ;;  %801 = vadd.xlane.f32.xlu0 %v754_v8  ;;  %v1973_v12 = vpop.f32.mrb[22].mxu0  ;;  %v393_v15 = vadd.f32 %v392_v4, %v391_v50  ;;  %v404_v16 = vrot.slane %v403_v5, 2  ;;  %v409_v17 = vadd.f32 %v2436_v48, %v408_v59 }
 0x106   :  { %v2450_v19 = vpop.eup %2087  ;;  %2099 = vtanh.f32 %v1973_v12  ;;  %v254_v21 = vpop.f32.mrb[23].mxu0  ;;  %v2452_v24 = vadd.f32 %v388_v10, %v387_v55  ;;  %v399_v25 = vadd.f32 %v398_v11, %v397_v56  ;;  %v415_v26 = vadd.f32 %v2424_v31, %v414_v52 }
 0x107   :  { %3205 = vst [vmem:[#allocation11_spill] sm:$0xff] %v2450_v19  ;;  %v2455_v29 = vpop.eup %2089  ;;  %2101 = vtanh.f32 %v254_v21  ;;  %v394_v30 = vrot.slane %v393_v15, 1  ;;  %v405_v33 = vadd.f32 %v404_v16, %v403_v5  ;;  %v410_v34 = vrot.slane %v409_v17, 2 }
 0x108   :  { %3206 = vst [vmem:[#allocation12_spill] sm:$0xff] %v2455_v29  ;;  %v2457_v35 = vpop.eup %2091  ;;  %v426_v36 = vrot.slane %v2455_v29, 4  ;;  %v400_v39 = vrot.slane %v399_v25, 1  ;;  %v416_v40 = vrot.slane %v415_v26, 2  ;;  %v420_v41 = vrot.slane %v2432_v43, 4 }
 0x109   :  { %3207 = vst [vmem:[#allocation13_spill] sm:$0xff] %v2457_v35  ;;  %v2461_v44 = vpop.eup %2093  ;;  %v2463_v45 = vadd.f32 %v394_v30, %v393_v15  ;;  %v406_v46 = vrot.slane %v405_v33, 1  ;;  %v411_v47 = vadd.f32 %v410_v34, %v409_v17  ;;  %v685_v49 = vmul.f32 %v2369_v23, %v2445_v1 }
 0x10a   :  { %3208 = vst [vmem:[#allocation14_spill] sm:$0xff] %v2461_v44  ;;  %v432_v50 = vrot.slane %v2461_v44, 4  ;;  %v2468_v51 = vadd.f32 %v400_v39, %v399_v25  ;;  %v417_v52 = vadd.f32 %v416_v40, %v415_v26  ;;  %v421_v54 = vadd.f32 %v2432_v43, %v420_v41 }
 0x10b   :  { %v1976_v55 = vpop.f32.mrb[24].mxu0  ;;  %v2471_v56 = vadd.f32 %v406_v46, %v405_v33  ;;  %v412_v59 = vrot.slane %v411_v47, 1  ;;  %v686_v61 = vmul.f32 %v2369_v23, %v2452_v24  ;;  %v687_v63 = vmul.f32 %v2369_v23, %v2463_v45 }
 0x10c   :  { %2103 = vtanh.f32 %v1976_v55  ;;  %v267_v4 = vpop.f32.mrb[25].mxu0  ;;  %v418_v5 = vrot.slane %v417_v52, 1  ;;  %v422_v6 = vrot.slane %v421_v54, 2  ;;  %v688_v8 = vmul.f32 %v2369_v23, %v2468_v51 }
 0x10d   :  { %2105 = vtanh.f32 %v267_v4  ;;  %v1977_v10 = vpop.f32.mrb[26].mxu0  ;;  %v2479_v11 = vadd.f32 %v412_v59, %v411_v47  ;;  %v689_v12 = vmul.f32 %v2369_v23, %v2471_v56  ;;  %v755_v15 = vrot.slane %v686_v61, 7 }
 0x10e   :  { %v2483_v16 = vpop.eup %2095  ;;  %2107 = vtanh.f32 %v1977_v10  ;;  %v270_v17 = vpop.f32.mrb[27].mxu0  ;;  %v2485_v21 = vadd.f32 %v418_v5, %v417_v52  ;;  %v423_v25 = vadd.f32 %v422_v6, %v421_v54  ;;  %v757_v26 = vrot.slane %v687_v63, 6 }
 0x10f   :  { %3209 = vst [vmem:[#allocation15_spill] sm:$0xff] %v2483_v16  ;;  %v2487_v30 = vpop.eup %2097  ;;  %2109 = vtanh.f32 %v270_v17  ;;  %v690_v33 = vmul.f32 %v2369_v23, %v2479_v11  ;;  %v756_v34 = vsel %vm591_vm2, %v755_v15, %v685_v49  ;;  %v759_v39 = vrot.slane %v688_v8, 5 }
 0x110   :  { %3210 = vst [vmem:[#allocation16_spill] sm:$0xff] %v2487_v30  ;;  %v2492_v40 = vpop.eup %2099  ;;  %v424_v41 = vrot.slane %v423_v25, 1  ;;  %v691_v46 = vmul.f32 %v2369_v23, %v2485_v21  ;;  %v758_v47 = vsel %vm594_vm3, %v757_v26, %v756_v34  ;;  %v761_v52 = vrot.slane %v689_v12, 4 }
 0x111   :  { %3211 = vst [vmem:[#allocation17_spill] sm:$0xff] %v2492_v40  ;;  %v2497_v54 = vpop.eup %2101  ;;  %v760_v55 = vsel %vm597_vm4, %v759_v39, %v758_v47  ;;  %v763_v59 = vrot.slane %v690_v33, 3  ;;  %v427_v61 = vadd.f32 %v2455_v29, %v426_v36  ;;  %v433_v63 = vadd.f32 %v2461_v44, %v432_v50 }
 0x112   :  { %3212 = vst [vmem:[#allocation18_spill] sm:$0xff] %v2497_v54  ;;  %v2502_v49 = vadd.f32 %v424_v41, %v423_v25  ;;  %v762_v4 = vsel %vm600_vm5, %v761_v52, %v760_v55  ;;  %v765_v5 = vrot.slane %v691_v46, 2  ;;  %v438_v6 = vrot.slane %v2450_v19, 4 }
 0x113   :  { %v1980_v8 = vpop.f32.mrb[28].mxu0  ;;  %v764_v10 = vsel %vm603_vm6, %v763_v59, %v762_v4  ;;  %v428_v12 = vrot.slane %v427_v61, 2  ;;  %v434_v15 = vrot.slane %v433_v63, 2  ;;  %v444_v17 = vrot.slane %v2457_v35, 4 }
 0x114   :  { %2111 = vtanh.f32 %v1980_v8  ;;  %v283_v26 = vpop.f32.mrb[29].mxu0  ;;  %v692_v36 = vmul.f32 %v2369_v23, %v2502_v49  ;;  %v766_v50 = vsel %vm606_vm7, %v765_v5, %v764_v10  ;;  %v439_v25 = vadd.f32 %v2450_v19, %v438_v6 }
 0x115   :  { %2113 = vtanh.f32 %v283_v26  ;;  %v1981_v33 = vpop.f32.mrb[30].mxu0  ;;  %v429_v34 = vadd.f32 %v428_v12, %v427_v61  ;;  %v435_v39 = vadd.f32 %v434_v15, %v433_v63  ;;  %v445_v41 = vadd.f32 %v2457_v35, %v444_v17 }
 0x116   :  { %v2513_v46 = vpop.eup %2103  ;;  %v767_v47 = vrot.slane %v692_v36, 1  ;;  %2115 = vtanh.f32 %v1981_v33  ;;  %v286_v52 = vpop.f32.mrb[31].mxu0  ;;  %v440_v55 = vrot.slane %v439_v25, 2  ;;  %v450_v59 = vrot.slane %v2487_v30, 4 }
 0x117   :  { %3213 = vst [vmem:[#allocation19_spill] sm:$0xff] %v2513_v46  ;;  %v2516_v4 = vpop.eup %2105  ;;  %2117 = vtanh.f32 %v286_v52  ;;  %v430_v5 = vrot.slane %v429_v34, 1  ;;  %v436_v8 = vrot.slane %v435_v39, 1  ;;  %v446_v6 = vrot.slane %v445_v41, 2 }
 0x118   :  { %3214 = vst [vmem:[#allocation20_spill] sm:$0xff] %v2516_v4  ;;  %v2518_v10 = vpop.eup %2107  ;;  %v474_v61 = vrot.slane %v2516_v4, 4  ;;  %v768_v63 = vsel %vm609_vm8, %v767_v47, %v766_v50  ;;  %v441_v12 = vadd.f32 %v440_v55, %v439_v25  ;;  %v451_v15 = vadd.f32 %v2487_v30, %v450_v59 }
 0x119   :  { %3215 = vst [vmem:[#allocation21_spill] sm:$0xff] %v2518_v10  ;;  %v2523_v17 = vpop.eup %2109  ;;  %803 = vadd.xlane.f32.xlu0 %v768_v63  ;;  %v2525_v26 = vadd.f32 %v430_v5, %v429_v34  ;;  %v2527_v36 = vadd.f32 %v436_v8, %v435_v39  ;;  %v447_v33 = vadd.f32 %v446_v6, %v445_v41  ;;  %v456_v52 = vrot.slane %v2497_v54, 4 }
 0x11a   :  { %3216 = vst [vmem:[#allocation22_spill] sm:$0xff] %v2523_v17  ;;  %v480_v35 = vrot.slane %v2523_v17, 4  ;;  %v442_v19 = vrot.slane %v441_v12, 1  ;;  %v452_v44 = vrot.slane %v451_v15, 2  ;;  %v462_v29 = vrot.slane %v2483_v16, 4 }
 0x11b   :  { %v448_v50 = vrot.slane %v447_v33, 1  ;;  %v457_v25 = vadd.f32 %v2497_v54, %v456_v52  ;;  %v468_v47 = vrot.slane %v2492_v40, 4  ;;  %v693_v34 = vmul.f32 %v2369_v23, %v2525_v26 }
 0x11c   :  { %v2536_v55 = vadd.f32 %v442_v19, %v441_v12  ;;  %v453_v39 = vadd.f32 %v452_v44, %v451_v15  ;;  %v463_v41 = vadd.f32 %v2483_v16, %v462_v29  ;;  %v694_v59 = vmul.f32 %v2369_v23, %v2527_v36 }
 0x11d   :  { %v2541_v5 = vadd.f32 %v448_v50, %v447_v33  ;;  %v458_v8 = vrot.slane %v457_v25, 2  ;;  %v469_v6 = vadd.f32 %v2492_v40, %v468_v47  ;;  %v475_v63 = vadd.f32 %v2516_v4, %v474_v61 }
 0x11e   :  { %v2545_v52 = vpop.eup %2111  ;;  %v454_v54 = vrot.slane %v453_v39, 1  ;;  %v464_v30 = vrot.slane %v463_v41, 2  ;;  %v695_v19 = vmul.f32 %v2369_v23, %v2536_v55  ;;  %v769_v44 = vrot.slane %v694_v59, 7 }
 0x11f   :  { %3217 = vst [vmem:[#allocation23_spill] sm:$0xff] %v2545_v52  ;;  %v2549_v12 = vpop.eup %2113  ;;  %v459_v29 = vadd.f32 %v458_v8, %v457_v25  ;;  %v470_v15 = vrot.slane %v469_v6, 2  ;;  %v696_v33 = vmul.f32 %v2369_v23, %v2541_v5  ;;  %v476_v50 = vrot.slane %v475_v63, 2 }
 0x120   :  { %v2553_v16 = vpop.eup %2115  ;;  %v2555_v47 = vadd.f32 %v454_v54, %v453_v39  ;;  %v465_v61 = vadd.f32 %v464_v30, %v463_v41  ;;  %v770_v4 = vsel %vm591_vm2, %v769_v44, %v693_v34  ;;  %v771_v40 = vrot.slane %v695_v19, 6 }
 0x121   :  { %3218 = vst [vmem:[#allocation24_spill] sm:$0xff] %v2553_v16  ;;  %v2558_v43 = vpop.eup %2117  ;;  %v460_v31 = vrot.slane %v459_v29, 1  ;;  %v471_v59 = vadd.f32 %v470_v15, %v469_v6  ;;  %v773_v48 = vrot.slane %v696_v33, 5  ;;  %v477_v38 = vadd.f32 %v476_v50, %v475_v63 }
 0x122   :  { %v466_v25 = vrot.slane %v465_v61, 1  ;;  %v697_v8 = vmul.f32 %v2369_v23, %v2555_v47  ;;  %v772_v7 = vsel %vm594_vm3, %v771_v40, %v770_v4  ;;  %v481_v57 = vadd.f32 %v2523_v17, %v480_v35 }
 0x123   :  { %v2564_v54 = vadd.f32 %v460_v31, %v459_v29  ;;  %v472_v30 = vrot.slane %v471_v59, 1  ;;  %v774_v34 = vsel %vm597_vm4, %v773_v48, %v772_v7  ;;  %v478_v39 = vrot.slane %v477_v38, 1 }
 0x124   :  { %v2567_v41 = vadd.f32 %v466_v25, %v465_v61  ;;  %v775_v19 = vrot.slane %v697_v8, 4  ;;  %v482_v6 = vrot.slane %v481_v57, 2  ;;  %v486_v63 = vrot.slane %v2513_v46, 4 }
 0x125   :  { %v2570_v44 = vadd.f32 %v472_v30, %v471_v59  ;;  %v698_v15 = vmul.f32 %v2369_v23, %v2564_v54  ;;  %v2574_v40 = vadd.f32 %v478_v39, %v477_v38  ;;  %v492_v31 = vrot.slane %v2518_v10, 4 }
 0x126   :  { %v699_v35 = vmul.f32 %v2369_v23, %v2567_v41  ;;  %v776_v7 = vsel %vm600_vm5, %v775_v19, %v774_v34  ;;  %v483_v48 = vadd.f32 %v482_v6, %v481_v57  ;;  %v487_v4 = vadd.f32 %v2513_v46, %v486_v63 }
 0x127   :  { %v700_v29 = vmul.f32 %v2369_v23, %v2570_v44  ;;  %v777_v33 = vrot.slane %v698_v15, 3  ;;  %v493_v50 = vadd.f32 %v2518_v10, %v492_v31  ;;  %v498_v61 = vrot.slane %v2549_v12, 4 }
 0x128   :  { %v779_v38 = vrot.slane %v699_v35, 2  ;;  %v484_v59 = vrot.slane %v483_v48, 1  ;;  %v488_v25 = vrot.slane %v487_v4, 2  ;;  %v504_v8 = vrot.slane %v2558_v43, 4 }
 0x129   :  { %v778_v30 = vsel %vm603_vm6, %v777_v33, %v776_v7  ;;  %v781_v39 = vrot.slane %v700_v29, 1  ;;  %v494_v34 = vrot.slane %v493_v50, 2  ;;  %v499_v57 = vadd.f32 %v2549_v12, %v498_v61 }
 0x12a   :  { %v780_v19 = vsel %vm606_vm7, %v779_v38, %v778_v30  ;;  %v2589_v6 = vadd.f32 %v484_v59, %v483_v48  ;;  %v489_v63 = vadd.f32 %v488_v25, %v487_v4  ;;  %v505_v15 = vadd.f32 %v2558_v43, %v504_v8 }
 0x12b   :  { %v782_v31 = vsel %vm609_vm8, %v781_v39, %v780_v19  ;;  %v495_v35 = vadd.f32 %v494_v34, %v493_v50  ;;  %v500_v10 = vrot.slane %v499_v57, 2  ;;  %v510_v46 = vrot.slane %v2545_v52, 4 }
 0x12c   :  { %805 = vadd.xlane.f32.xlu1 %v782_v31  ;;  %v490_v17 = vrot.slane %v489_v63, 1  ;;  %v506_v7 = vrot.slane %v505_v15, 2  ;;  %v516_v29 = vrot.slane %v2553_v16, 4  ;;  %v702_v48 = vmul.f32 %v2369_v23, %v2589_v6 }
 0x12d   :  { %v496_v33 = vrot.slane %v495_v35, 1  ;;  %v501_v61 = vadd.f32 %v500_v10, %v499_v57  ;;  %v511_v38 = vadd.f32 %v2545_v52, %v510_v46  ;;  %v701_v25 = vmul.f32 %v2369_v23, %v2574_v40  ;;  %v2608_v46 = vld [vmem:[%s3176_s1 + $0x88] ss:$0 sm:$0xff] }
 0x12e   :  { %v2598_v4 = vadd.f32 %v490_v17, %v489_v63  ;;  %v507_v59 = vadd.f32 %v506_v7, %v505_v15  ;;  %v517_v50 = vadd.f32 %v2553_v16, %v516_v29  ;;  %v783_v34 = vrot.slane %v702_v48, 7 }
 0x12f   :  { %v2603_v8 = vadd.f32 %v496_v33, %v495_v35  ;;  %v502_v30 = vrot.slane %v501_v61, 1  ;;  %v512_v39 = vrot.slane %v511_v38, 2  ;;  %v535_v19 = vmul.f32 %v2608_v46, %v2452_v24 }
 0x130   :  { %v508_v10 = vrot.slane %v507_v59, 1  ;;  %v518_v57 = vrot.slane %v517_v50, 2  ;;  %v703_v17 = vmul.f32 %v2369_v23, %v2598_v4  ;;  %v784_v35 = vsel %vm591_vm2, %v783_v34, %v701_v25 }
 0x131   :  { %v2614_v63 = vadd.f32 %v502_v30, %v501_v61  ;;  %v513_v15 = vadd.f32 %v512_v39, %v511_v38  ;;  %v704_v31 = vmul.f32 %v2369_v23, %v2603_v8  ;;  %v536_v48 = vmul.f32 %v2608_v46, %v2463_v45 }
 0x132   :  { %v2619_v7 = vadd.f32 %v508_v10, %v507_v59  ;;  %v519_v29 = vadd.f32 %v518_v57, %v517_v50  ;;  %v785_v33 = vrot.slane %v703_v17, 6  ;;  %v537_v61 = vmul.f32 %v2608_v46, %v2468_v51 }
 0x133   :  { %v514_v16 = vrot.slane %v513_v15, 1  ;;  %v705_v52 = vmul.f32 %v2369_v23, %v2614_v63  ;;  %v787_v24 = vrot.slane %v704_v31, 5  ;;  %v538_v50 = vmul.f32 %v2608_v46, %v2471_v56 }
 0x134   :  { %v520_v38 = vrot.slane %v519_v29, 1  ;;  %v706_v30 = vmul.f32 %v2369_v23, %v2619_v7  ;;  %v786_v59 = vsel %vm594_vm3, %v785_v33, %v784_v35  ;;  %v539_v34 = vmul.f32 %v2608_v46, %v2479_v11 }
 0x135   :  { %v515_v25 = vadd.f32 %v514_v16, %v513_v15  ;;  %v788_v45 = vsel %vm597_vm4, %v787_v24, %v786_v59  ;;  %v789_v39 = vrot.slane %v705_v52, 4  ;;  %v534_v51 = vmul.f32 %v2608_v46, %v2445_v1 }
 0x136   :  { %v521_v10 = vadd.f32 %v520_v38, %v519_v29  ;;  %v791_v57 = vrot.slane %v706_v30, 3  ;;  %v540_v17 = vmul.f32 %v2608_v46, %v2485_v21  ;;  %v541_v56 = vmul.f32 %v2608_v46, %v2502_v49 }
 0x137   :  { %v707_v31 = vmul.f32 %v2369_v23, %v515_v25  ;;  %v790_v35 = vsel %vm600_vm5, %v789_v39, %v788_v45  ;;  %v611_v16 = vrot.slane %v535_v19, 7  ;;  %v613_v15 = vrot.slane %v536_v48, 6 }
 0x138   :  { %v708_v52 = vmul.f32 %v2369_v23, %v521_v10  ;;  %v792_v11 = vsel %vm603_vm6, %v791_v57, %v790_v35  ;;  %v617_v29 = vrot.slane %v538_v50, 4  ;;  %v615_v24 = vrot.slane %v537_v61, 5 }
 0x139   :  { %v793_v33 = vrot.slane %v707_v31, 2  ;;  %v612_v1 = vsel %vm591_vm2, %v611_v16, %v534_v51  ;;  %v619_v38 = vrot.slane %v539_v34, 3  ;;  %v621_v19 = vrot.slane %v540_v17, 2 }
 0x13a   :  { %v795_v21 = vrot.slane %v708_v52, 1  ;;  %v614_v30 = vsel %vm594_vm3, %v613_v15, %v612_v1  ;;  %v623_v50 = vrot.slane %v541_v56, 1  ;;  %v543_v34 = vmul.f32 %v2608_v46, %v2527_v36 }
 0x13b   :  { %v794_v59 = vsel %vm606_vm7, %v793_v33, %v792_v11  ;;  %v616_v45 = vsel %vm597_vm4, %v615_v24, %v614_v30  ;;  %v544_v57 = vmul.f32 %v2608_v46, %v2536_v55  ;;  %v545_v51 = vmul.f32 %v2608_v46, %v2541_v5 }
 0x13c   :  { %v796_v49 = vsel %vm609_vm8, %v795_v21, %v794_v59  ;;  %v618_v23 = vsel %vm600_vm5, %v617_v29, %v616_v45  ;;  %v546_v17 = vmul.f32 %v2608_v46, %v2555_v47  ;;  %v547_v31 = vmul.f32 %v2608_v46, %v2564_v54 }
 0x13d   :  { %807 = vadd.xlane.f32.xlu1 %v796_v49  ;;  %v620_v48 = vsel %vm603_vm6, %v619_v38, %v618_v23  ;;  %v542_v35 = vmul.f32 %v2608_v46, %v2525_v26  ;;  %v548_v56 = vmul.f32 %v2608_v46, %v2567_v41  ;;  %v549_v36 = vmul.f32 %v2608_v46, %v2570_v44 }
 0x13e   :  { %v622_v39 = vsel %vm606_vm7, %v621_v19, %v620_v48  ;;  %v625_v16 = vrot.slane %v543_v34, 7  ;;  %v627_v55 = vrot.slane %v544_v57, 6  ;;  %v629_v5 = vrot.slane %v545_v51, 5  ;;  %v2707_v51 = vld [vmem:[%s3176_s1 + $0x8a] ss:$0 sm:$0xff] }
 0x13f   :  { %v2654_v61 = vsel %vm609_vm8, %v623_v50, %v622_v39  ;;  %v631_v11 = vrot.slane %v546_v17, 4  ;;  %v633_v15 = vrot.slane %v547_v31, 3  ;;  %v635_v29 = vrot.slane %v548_v56, 2 }
 0x140   :  { %v626_v52 = vsel %vm591_vm2, %v625_v16, %v542_v35  ;;  %v637_v33 = vrot.slane %v549_v36, 1  ;;  %v551_v26 = vmul.f32 %v2608_v46, %v2589_v6  ;;  %v552_v41 = vmul.f32 %v2608_v46, %v2598_v4 }
 0x141   :  { %v628_v47 = vsel %vm594_vm3, %v627_v55, %v626_v52  ;;  %v553_v1 = vmul.f32 %v2608_v46, %v2603_v8  ;;  %v554_v24 = vmul.f32 %v2608_v46, %v2614_v63  ;;  %v555_v38 = vmul.f32 %v2608_v46, %v2619_v7 }
 0x142   :  { %v630_v54 = vsel %vm597_vm4, %v629_v5, %v628_v47  ;;  %v550_v30 = vmul.f32 %v2608_v46, %v2574_v40  ;;  %v556_v6 = vmul.f32 %v2608_v46, %v515_v25  ;;  %v639_v59 = vrot.slane %v551_v26, 7 }
 0x143   :  { %v632_v44 = vsel %vm600_vm5, %v631_v11, %v630_v54  ;;  %v557_v45 = vmul.f32 %v2608_v46, %v521_v10  ;;  %v641_v49 = vrot.slane %v552_v41, 6  ;;  %v645_v8 = vrot.slane %v554_v24, 4 }
 0x144   :  { %v634_v21 = vsel %vm603_vm6, %v633_v15, %v632_v44  ;;  %v640_v63 = vsel %vm591_vm2, %v639_v59, %v550_v30  ;;  %v643_v7 = vrot.slane %v553_v1, 5  ;;  %v647_v19 = vrot.slane %v555_v38, 3 }
 0x145   :  { %v636_v4 = vsel %vm606_vm7, %v635_v29, %v634_v21  ;;  %v642_v48 = vsel %vm594_vm3, %v641_v49, %v640_v63  ;;  %v649_v50 = vrot.slane %v556_v6, 2  ;;  %v651_v34 = vrot.slane %v557_v45, 1 }
 0x146   :  { %v2693_v23 = vsel %vm609_vm8, %v637_v33, %v636_v4  ;;  %v644_v40 = vsel %vm597_vm4, %v643_v7, %v642_v48  ;;  %v2202_v15 = vmov 1966171168   ;;  %v873_v29 = vlaneseq }
 0x147   :  { %v646_v25 = vsel %vm600_vm5, %v645_v8, %v644_v40  ;;  %v871_v47 = vunpack.c.l.s4 %v2202_v15  ;;  %v2203_v44 = vmov 4  }
 0x148   :  { %v648_v39 = vsel %vm603_vm6, %v647_v19, %v646_v25  ;;  %v874_v41 = vshrl.u32 %v873_v29, 7  ;;  %2053 = vset.pattern.permute.xlu1 %v2203_v44  ;;  %2054 = vset.pattern.permute.xlu0 %v2203_v44 }
 0x149   :  { %v650_v10 = vsel %vm606_vm7, %v649_v50, %v648_v39  ;;  %v872_v26 = vunpack.c.0.s8 %v871_v47 }
 0x14a   :  { %v2702_v57 = vsel %vm609_vm8, %v651_v34, %v650_v10  ;;  %v2719_v8 = vsub.s32 0, %v874_v41 }
 0x14b   :  { %v2714_v24 = vsub.s32 %v872_v26, %v874_v41 }
 0x192   :  { %v802_v17 = vpop.xlane.xlu0 %801 }
 0x193   :  { %v809_v31 = vadd.f32 %v2707_v51, %v802_v17 }
 0x195   :  { %v813_v35 = vand.u32 2147483647, %v809_v31  ;;  %v837_v30 = vmax.f32 %v809_v31, 0.0  ;;  %vm853_vm9 = vcmp.ge.f32.partialorder %v809_v31, 0.0 }
 0x197   :  { %v817_v56 = vsub.f32 0.0, %v813_v35 }
 0x199   :  { %v821_v36 = vmul.f32 1.442695, %v817_v56 }
 0x19b   :  { %2119 = vpow2.f32 %v821_v36 }
 0x1a5   :  { %v2120_v16 = vpop.eup %2119 }
 0x1a6   :  { %v829_v55 = vadd.f32 1.0, %v2120_v16  ;;  %v804_v52 = vpop.xlane.xlu0 %803 }
 0x1a7   :  { %v2711_v5 = vadd.f32 %v2707_v51, %v804_v52 }
 0x1a8   :  { %2121 = vrcp.f32 %v829_v55 }
 0x1a9   :  { %2123 = vlog2.f32 %v829_v55  ;;  %v814_v11 = vand.u32 2147483647, %v2711_v5  ;;  %v838_v44 = vmax.f32 %v2711_v5, 0.0  ;;  %vm854_vm10 = vcmp.ge.f32.partialorder %v2711_v5, 0.0 }
 0x1ab   :  { %v818_v54 = vsub.f32 0.0, %v814_v11 }
 0x1ad   :  { %v823_v33 = vmul.f32 1.442695, %v818_v54 }
 0x1af   :  { %2125 = vpow2.f32 %v823_v33 }
 0x1b2   :  { %v2122_v1 = vpop.eup %2121 }
 0x1b3   :  { %v2124_v38 = vpop.eup %2123  ;;  %v857_v21 = vmul.f32 %v2122_v1, %v2120_v16 }
 0x1b4   :  { %v842_v6 = vmul.f32 0.6931472, %v2124_v38 }
 0x1b5   :  { %v861_v59 = vsel %vm853_vm9, %v2122_v1, %v857_v21 }
 0x1b6   :  { %v2716_v4 = vadd.f32 %v842_v6, %v837_v30  ;;  %v869_v45 = vcombine.high %v861_v59, %v861_v59  ;;  %v876_v49 = vrot.slane %v861_v59, %v2714_v24 }
 0x1b8   :  { %v892_v63 = vrot.slane %v876_v49, %v2714_v24  ;;  %v884_v7 = vcombine.high %v876_v49, %v876_v49  ;;  %v883_v19 = vrot.slane %v869_v45, %v2714_v24 }
 0x1b9   :  { %v2126_v48 = vpop.eup %2125  ;;  %v806_v40 = vpop.xlane.xlu1 %805 }
 0x1ba   :  { %v830_v25 = vadd.f32 1.0, %v2126_v48  ;;  %v2724_v50 = vadd.f32 %v2707_v51, %v806_v40  ;;  %v1068_v39 = vrot.slane %v892_v63, %v2719_v8  ;;  %v906_v34 = vrot.slane %v884_v7, %v2714_v24 }
 0x1bb   :  { %v899_v10 = vrot.slane %v883_v19, %v2714_v24  ;;  %v885_v17 = vcombine.high %v883_v19, %v883_v19  ;;  %v914_v55 = vcombine.high %v892_v63, %v892_v63 }
 0x1bc   :  { %2127 = vrcp.f32 %v830_v25  ;;  %v815_v31 = vand.u32 2147483647, %v2724_v50  ;;  %1193 = vrot.lane.b32.xlu0 %v1068_v39, %s2204_s30  ;;  %v1072_v35 = vrot.slane %v906_v34, %v2719_v8  ;;  %v916_v54 = vcombine.high %v906_v34, %v906_v34 }
 0x1bd   :  { %2129 = vlog2.f32 %v830_v25  ;;  %v913_v56 = vrot.slane %v885_v17, %v2714_v24  ;;  %v1084_v16 = vrot.slane %v899_v10, %v2719_v8  ;;  %v915_v15 = vcombine.high %v899_v10, %v899_v10 }
 0x1be   :  { %v819_v36 = vsub.f32 0.0, %v815_v31  ;;  %1195 = vrot.lane.b32.xlu1 %v1072_v35, %s2204_s30  ;;  %v1076_v47 = vrot.slane %v914_v55, %v2719_v8  ;;  %v1080_v21 = vrot.slane %v916_v54, %v2719_v8  ;;  %vm855_vm11 = vcmp.ge.f32.partialorder %v2724_v50, 0.0 }
 0x1bf   :  { %v1088_v11 = vrot.slane %v913_v56, %v2719_v8  ;;  %v1092_v29 = vrot.slane %v915_v15, %v2719_v8  ;;  %v917_v30 = vcombine.high %v913_v56, %v913_v56 }
 0x1c0   :  { %v825_v52 = vmul.f32 1.442695, %v819_v36  ;;  %1201 = vrot.lane.b32.xlu0 %v1084_v16, %s2204_s30 }
 0x1c1   :  { %v1096_v25 = vrot.slane %v917_v30, %v2719_v8 }
 0x1c2   :  { %2131 = vpow2.f32 %v825_v52  ;;  %1203 = vrot.lane.b32.xlu1 %v1088_v11, %s2204_s30 }
 0x1c4   :  { %1197 = vrot.lane.b32.xlu0 %v1076_v47, %s2204_s30 }
 0x1c6   :  { %v2128_v33 = vpop.eup %2127  ;;  %1205 = vrot.lane.b32.xlu1 %v1092_v29, %s2204_s30 }
 0x1c7   :  { %v2130_v26 = vpop.eup %2129  ;;  %v858_v41 = vmul.f32 %v2128_v33, %v2126_v48 }
 0x1c8   :  { %v844_v1 = vmul.f32 0.6931472, %v2130_v26 }
 0x1c9   :  { %v862_v38 = vsel %vm854_vm10, %v2128_v33, %v858_v41 }
 0x1ca   :  { %v2745_v6 = vadd.f32 %v844_v1, %v838_v44  ;;  %v918_v59 = vcombine.high %v862_v38, %v862_v38  ;;  %v808_v45 = vpop.xlane.xlu1 %807  ;;  %v925_v49 = vrot.slane %v862_v38, %v2714_v24  ;;  %1199 = vrot.lane.b32.xlu1 %v1080_v21, %s2204_s30  ;;  %v839_v1 = vmax.f32 %v2724_v50, 0.0 }
 0x1cb   :  { %v2749_v63 = vadd.f32 %v2707_v51, %v808_v45 }
 0x1cc   :  { %v2132_v7 = vpop.eup %2131  ;;  %v941_v19 = vrot.slane %v925_v49, %v2714_v24  ;;  %v933_v48 = vcombine.high %v925_v49, %v925_v49  ;;  %v932_v39 = vrot.slane %v918_v59, %v2714_v24 }
 0x1cd   :  { %v831_v5 = vadd.f32 1.0, %v2132_v7  ;;  %v816_v40 = vand.u32 2147483647, %v2749_v63  ;;  %vm856_vm12 = vcmp.ge.f32.partialorder %v2749_v63, 0.0 }
 0x1ce   :  { %v1100_v34 = vrot.slane %v941_v19, %v2719_v8  ;;  %v963_v10 = vcombine.high %v941_v19, %v941_v19  ;;  %v955_v17 = vrot.slane %v933_v48, %v2714_v24  ;;  %1207 = vrot.lane.b32.xlu1 %v1096_v25, %s2204_s30  ;;  %v934_v36 = vcombine.high %v932_v39, %v932_v39 }
 0x1cf   :  { %2133 = vrcp.f32 %v831_v5  ;;  %v820_v51 = vsub.f32 0.0, %v816_v40  ;;  %v948_v55 = vrot.slane %v932_v39, %v2714_v24 }
 0x1d0   :  { %2135 = vlog2.f32 %v831_v5  ;;  %1209 = vrot.lane.b32.xlu0 %v1100_v34, %s2204_s30  ;;  %v1104_v35 = vrot.slane %v955_v17, %v2719_v8  ;;  %v965_v56 = vcombine.high %v955_v17, %v955_v17  ;;  %v1108_v16 = vrot.slane %v963_v10, %v2719_v8 }
 0x1d1   :  { %v827_v31 = vmul.f32 1.442695, %v820_v51  ;;  %v962_v11 = vrot.slane %v934_v36, %v2714_v24  ;;  %v1116_v15 = vrot.slane %v948_v55, %v2719_v8  ;;  %v964_v47 = vcombine.high %v948_v55, %v948_v55 }
 0x1d2   :  { %1211 = vrot.lane.b32.xlu1 %v1104_v35, %s2204_s30  ;;  %v1112_v52 = vrot.slane %v965_v56, %v2719_v8 }
 0x1d3   :  { %2137 = vpow2.f32 %v827_v31  ;;  %v1120_v54 = vrot.slane %v962_v11, %v2719_v8  ;;  %v966_v33 = vcombine.high %v962_v11, %v962_v11  ;;  %v1124_v44 = vrot.slane %v964_v47, %v2719_v8 }
 0x1d4   :  { %1213 = vrot.lane.b32.xlu0 %v1108_v16, %s2204_s30 }
 0x1d6   :  { %1215 = vrot.lane.b32.xlu1 %v1112_v52, %s2204_s30 }
 0x1d8   :  { %1217 = vrot.lane.b32.xlu0 %v1116_v15, %s2204_s30 }
 0x1d9   :  { %v2134_v29 = vpop.eup %2133 }
 0x1da   :  { %v2136_v26 = vpop.eup %2135  ;;  %v859_v41 = vmul.f32 %v2134_v29, %v2132_v7  ;;  %1219 = vrot.lane.b32.xlu1 %v1120_v54, %s2204_s30  ;;  %v1128_v7 = vrot.slane %v966_v33, %v2719_v8 }
 0x1db   :  { %v846_v38 = vmul.f32 0.6931472, %v2136_v26 }
 0x1dc   :  { %v863_v21 = vsel %vm855_vm11, %v2134_v29, %v859_v41  ;;  %1221 = vrot.lane.b32.xlu0 %v1124_v44, %s2204_s30  ;;  %v840_v29 = vmax.f32 %v2749_v63, 0.0 }
 0x1dd   :  { %v2138_v30 = vpop.eup %2137  ;;  %v2776_v59 = vadd.f32 %v846_v38, %v839_v1  ;;  %v967_v45 = vcombine.high %v863_v21, %v863_v21  ;;  %v974_v49 = vrot.slane %v863_v21, %v2714_v24 }
 0x1de   :  { %v832_v19 = vadd.f32 1.0, %v2138_v30  ;;  %1223 = vrot.lane.b32.xlu1 %v1128_v7, %s2204_s30 }
 0x1df   :  { %v990_v48 = vrot.slane %v974_v49, %v2714_v24  ;;  %v982_v5 = vcombine.high %v974_v49, %v974_v49  ;;  %v981_v50 = vrot.slane %v967_v45, %v2714_v24 }
 0x1e0   :  { %2139 = vrcp.f32 %v832_v19 }
 0x1e1   :  { %2141 = vlog2.f32 %v832_v19  ;;  %v1132_v40 = vrot.slane %v990_v48, %v2719_v8  ;;  %v1012_v25 = vcombine.high %v990_v48, %v990_v48  ;;  %v1004_v39 = vrot.slane %v982_v5, %v2714_v24 }
 0x1e2   :  { %v983_v17 = vcombine.high %v981_v50, %v981_v50  ;;  %v997_v31 = vrot.slane %v981_v50, %v2714_v24 }
 0x1e3   :  { %1225 = vrot.lane.b32.xlu0 %v1132_v40, %s2204_s30  ;;  %v1136_v34 = vrot.slane %v1004_v39, %v2719_v8  ;;  %v1014_v10 = vcombine.high %v1004_v39, %v1004_v39  ;;  %v1140_v51 = vrot.slane %v1012_v25, %v2719_v8 }
 0x1e4   :  { %v1011_v56 = vrot.slane %v983_v17, %v2714_v24  ;;  %v1148_v36 = vrot.slane %v997_v31, %v2719_v8  ;;  %v1013_v16 = vcombine.high %v997_v31, %v997_v31 }
 0x1e5   :  { %1227 = vrot.lane.b32.xlu1 %v1136_v34, %s2204_s30  ;;  %v1144_v35 = vrot.slane %v1014_v10, %v2719_v8 }
 0x1e6   :  { %v1152_v15 = vrot.slane %v1011_v56, %v2719_v8  ;;  %v1015_v47 = vcombine.high %v1011_v56, %v1011_v56  ;;  %v1156_v26 = vrot.slane %v1013_v16, %v2719_v8  ;;  %v49_v56 = vld [vmem:[%s3176_s1 + $0x10] sm:$0xff]  ;;  %v51_v16 = vld [vmem:[%s3176_s1 + $0x20] sm:$0xff] }
 0x1e7   :  { %1229 = vrot.lane.b32.xlu0 %v1140_v51, %s2204_s30 }
 0x1e8   :  { %v1160_v38 = vrot.slane %v1015_v47, %v2719_v8 }
 0x1e9   :  { %1231 = vrot.lane.b32.xlu1 %v1144_v35, %s2204_s30 }
 0x1ea   :  { %v2140_v55 = vpop.eup %2139 }
 0x1eb   :  { %v2142_v52 = vpop.eup %2141  ;;  %v860_v11 = vmul.f32 %v2140_v55, %v2138_v30  ;;  %1233 = vrot.lane.b32.xlu0 %v1148_v36, %s2204_s30 }
 0x1ec   :  { %v848_v54 = vmul.f32 0.6931472, %v2142_v52  ;;  %v52_v52 = vld [vmem:[%s3176_s1 + $0x28] sm:$0xff] }
 0x1ed   :  { %v864_v33 = vsel %vm856_vm12, %v2140_v55, %v860_v11  ;;  %1235 = vrot.lane.b32.xlu1 %v1152_v15, %s2204_s30  ;;  %v53_v11 = vld [vmem:[%s3176_s1 + $0x30] sm:$0xff] }
 0x1ee   :  { %v2801_v41 = vadd.f32 %v848_v54, %v840_v29  ;;  %v1016_v44 = vcombine.high %v864_v33, %v864_v33  ;;  %v1023_v1 = vrot.slane %v864_v33, %v2714_v24  ;;  %v1659_v15 = vpack.c.bf16 %v53_v11, %v52_v52  ;;  %v2143_v29 = vld [vmem:[%s3175_s0] sm:$0xff] }
 0x1ef   :  { %1237 = vrot.lane.b32.xlu0 %v1156_v26, %s2204_s30  ;;  %v2151_v11 = vld [vmem:[%s3175_s0 + $0x40] sm:$0xff] }
 0x1f0   :  { %v1039_v21 = vrot.slane %v1023_v1, %v2714_v24  ;;  %v1031_v30 = vcombine.high %v1023_v1, %v1023_v1  ;;  %v1030_v45 = vrot.slane %v1016_v44, %v2714_v24  ;;  %v2144_v44 = vld [vmem:[%s3175_s0 + $0x20] sm:$0xff] }
 0x1f1   :  { %1239 = vrot.lane.b32.xlu1 %v1160_v38, %s2204_s30 }
 0x1f2   :  { %v1164_v63 = vrot.slane %v1039_v21, %v2719_v8  ;;  %v1061_v49 = vcombine.high %v1039_v21, %v1039_v21  ;;  %v1053_v7 = vrot.slane %v1031_v30, %v2714_v24  ;;  %v1046_v19 = vrot.slane %v1030_v45, %v2714_v24  ;;  %v54_v21 = vld [vmem:[%s3176_s1 + $0x38] sm:$0xff]  ;;  %v55_v30 = vld [vmem:[%s3176_s1 + $0x40] sm:$0xff] }
 0x1f3   :  { %v1032_v48 = vcombine.high %v1030_v45, %v1030_v45 }
 0x1f4   :  { %1241 = vrot.lane.b32.xlu0 %v1164_v63, %s2204_s30  ;;  %v1168_v5 = vrot.slane %v1053_v7, %v2719_v8  ;;  %v1180_v50 = vrot.slane %v1046_v19, %v2719_v8  ;;  %v1063_v40 = vcombine.high %v1053_v7, %v1053_v7  ;;  %v1062_v25 = vcombine.high %v1046_v19, %v1046_v19  ;;  %v2146_v19 = vld [vmem:[%s3175_s0 + $0x10] sm:$0xff] }
 0x1f5   :  { %v1060_v39 = vrot.slane %v1032_v48, %v2714_v24  ;;  %v1172_v34 = vrot.slane %v1061_v49, %v2719_v8  ;;  %v48_v24 = vld [vmem:[%s3176_s1 + $0x8] sm:$0xff]  ;;  %v1660_v63 = vpack.c.bf16 %v55_v30, %v54_v21  ;;  %v62_v30 = vld [vmem:[%s3176_s1 + $0x78] sm:$0xff] }
 0x1f6   :  { %1243 = vrot.lane.b32.xlu1 %v1168_v5, %s2204_s30  ;;  %v1188_v10 = vrot.slane %v1062_v25, %v2719_v8  ;;  %v1176_v31 = vrot.slane %v1063_v40, %v2719_v8  ;;  %v1657_v36 = vpack.c.bf16 %v49_v56, %v48_v24  ;;  %v2145_v49 = vld [vmem:[%s3175_s0 + $0x8] sm:$0xff]  ;;  %v2149_v56 = vld [vmem:[%s3175_s0 + $0x30] sm:$0xff] }
 0x1f7   :  { %v1184_v17 = vrot.slane %v1060_v39, %v2719_v8  ;;  %v1064_v51 = vcombine.high %v1060_v39, %v1060_v39  ;;  %v56_v5 = vld [vmem:[%s3176_s1 + $0x48] sm:$0xff] }
 0x1f8   :  { %1245 = vrot.lane.b32.xlu0 %v1172_v34, %s2204_s30  ;;  %1982 = vmatprep.subr.bf16.mxu0 %v1657_v36  ;;  %v2147_v39 = vld [vmem:[%s3175_s0 + $0x28] sm:$0xff] }
 0x1f9   :  { %v1192_v35 = vrot.slane %v1064_v51, %v2719_v8  ;;  %v50_v8 = vld [vmem:[%s3176_s1 + $0x18] sm:$0xff]  ;;  %2030 = vmatprep.subr.bf16.mxu1 %v1657_v36  ;;  %1983 = vmatpush3.bf16.msra.mxu0 %v1657_v36  ;;  %v59_v51 = vld [vmem:[%s3176_s1 + $0x60] sm:$0xff] }
 0x1fa   :  { %1247 = vrot.lane.b32.xlu1 %v1176_v31, %s2204_s30  ;;  %v1658_v55 = vpack.c.bf16 %v51_v16, %v50_v8  ;;  %2038 = vmatpush3.bf16.msra.mxu1 %v1657_v36  ;;  %v2148_v31 = vld [vmem:[%s3175_s0 + $0x18] sm:$0xff] }
 0x1fc   :  { %1249 = vrot.lane.b32.xlu0 %v1180_v50, %s2204_s30  ;;  %1984 = vmatprep.subr.bf16.mxu0 %v1658_v55  ;;  %v57_v50 = vld [vmem:[%s3176_s1 + $0x50] sm:$0xff] }
 0x1fd   :  { %2031 = vmatprep.subr.bf16.mxu1 %v1658_v55  ;;  %1985 = vmatpush3.bf16.msra.mxu0 %v1658_v55  ;;  %v1661_v40 = vpack.c.bf16 %v57_v50, %v56_v5  ;;  %v2155_v5 = vld [vmem:[%s3175_s0 + $0x60] sm:$0xff] }
 0x1fe   :  { %1251 = vrot.lane.b32.xlu1 %v1184_v17, %s2204_s30  ;;  %2039 = vmatpush3.bf16.msra.mxu1 %v1658_v55  ;;  %v58_v17 = vld [vmem:[%s3176_s1 + $0x58] sm:$0xff] }
 0x1ff   :  { %1986 = vmatprep.subr.bf16.mxu0 %v1659_v15  ;;  %2032 = vmatprep.subr.bf16.mxu1 %v1659_v15  ;;  %v1662_v24 = vpack.c.bf16 %v59_v51, %v58_v17  ;;  %v2150_v55 = vld [vmem:[%s3175_s0 + $0x38] sm:$0xff] }
 0x200   :  { %1253 = vrot.lane.b32.xlu0 %v1188_v10, %s2204_s30 }
 0x201   :  { %1987 = vmatpush3.bf16.msra.mxu0 %v1659_v15 }
 0x202   :  { %1255 = vrot.lane.b32.xlu1 %v1192_v35, %s2204_s30  ;;  %2040 = vmatpush3.bf16.msra.mxu1 %v1659_v15 }
 0x203   :  { %1988 = vmatprep.subr.bf16.mxu0 %v1660_v63  ;;  %2033 = vmatprep.subr.bf16.mxu1 %v1660_v63 }
 0x205   :  { %1989 = vmatpush3.bf16.msra.mxu0 %v1660_v63 }
 0x206   :  { %2041 = vmatpush3.bf16.msra.mxu1 %v1660_v63  ;;  %1990 = vmatprep.subr.bf16.mxu0 %v1661_v40 }
 0x207   :  { %2034 = vmatprep.subr.bf16.mxu1 %v1661_v40 }
 0x209   :  { %1991 = vmatpush3.bf16.msra.mxu0 %v1661_v40 }
 0x20a   :  { %2042 = vmatpush3.bf16.msra.mxu1 %v1661_v40  ;;  %1992 = vmatprep.subr.bf16.mxu0 %v1662_v24 }
 0x20b   :  { %2035 = vmatprep.subr.bf16.mxu1 %v1662_v24 }
 0x20d   :  { %1993 = vmatpush3.bf16.msra.mxu0 %v1662_v24 }
 0x20e   :  { %2043 = vmatpush3.bf16.msra.mxu1 %v1662_v24 }
 0x22e   :  { %v1194_v47 = vpop.permute.xlu0 %1193 }
 0x22f   :  { %v1289_v54 = vmul.f32 %v2143_v29, %v1194_v47 }
 0x230   :  { %v1196_v33 = vpop.permute.xlu1 %1195 }
 0x231   :  { %1323 = vperm.xlu1 %2053, %v1289_v54   ;;  %v1290_v7 = vmul.f32 %v2145_v49, %v1196_v33  ;;  %v2152_v54 = vld [vmem:[%s3175_s0 + $0x48] sm:$0xff] }
 0x232   :  { %v1202_v26 = vpop.permute.xlu0 %1201 }
 0x233   :  { %v1293_v1 = vmul.f32 %v2144_v44, %v1202_v26  ;;  %v60_v26 = vld [vmem:[%s3176_s1 + $0x68] sm:$0xff]  ;;  %v61_v44 = vld [vmem:[%s3176_s1 + $0x70] sm:$0xff] }
 0x234   :  { %v1204_v38 = vpop.permute.xlu1 %1203  ;;  %v1663_v21 = vpack.c.bf16 %v61_v44, %v60_v26  ;;  %v2163_v26 = vld [vmem:[%s3175_s0 + $0xa0] sm:$0xff] }
 0x235   :  { %1343 = vperm.xlu0 %2054, %v1293_v1   ;;  %v1294_v34 = vmul.f32 %v2147_v39, %v1204_v38  ;;  %v2153_v1 = vld [vmem:[%s3175_s0 + $0x50] sm:$0xff]  ;;  %v2156_v39 = vld [vmem:[%s3175_s0 + $0x68] sm:$0xff] }
 0x236   :  { %v1198_v45 = vpop.permute.xlu0 %1197  ;;  %1994 = vmatprep.subr.bf16.mxu0 %v1663_v21  ;;  %2036 = vmatprep.subr.bf16.mxu1 %v1663_v21 }
 0x237   :  { %v1291_v48 = vmul.f32 %v2146_v19, %v1198_v45  ;;  %v63_v45 = vld [vmem:[%s3176_s1 + $0x80] sm:$0xff]  ;;  %v2154_v19 = vld [vmem:[%s3175_s0 + $0x58] sm:$0xff]  ;;  %1995 = vmatpush3.bf16.msra.mxu0 %v1663_v21  ;;  %2044 = vmatpush3.bf16.msra.mxu1 %v1663_v21 }
 0x238   :  { %v1206_v25 = vpop.permute.xlu1 %1205  ;;  %v1664_v49 = vpack.c.bf16 %v63_v45, %v62_v30  ;;  %v2165_v45 = vld [vmem:[%s3175_s0 + $0xb0] sm:$0xff] }
 0x239   :  { %1333 = vperm.xlu1 %2053, %v1291_v48   ;;  %1328 = vperm.xlu0 %2054, %v1290_v7   ;;  %v1295_v8 = vmul.f32 %v2149_v56, %v1206_v25  ;;  %v2159_v56 = vld [vmem:[%s3175_s0 + $0x80] sm:$0xff] }
 0x23a   :  { %1996 = vmatprep.subr.bf16.mxu0 %v1664_v49  ;;  %2037 = vmatprep.subr.bf16.mxu1 %v1664_v49 }
 0x23b   :  { %1997 = vmatpush3.bf16.msra.mxu0 %v1664_v49  ;;  %2045 = vmatpush3.bf16.msra.mxu1 %v1664_v49 }
 0x23c   :  { %v1200_v10 = vpop.permute.xlu1 %1199 }
 0x23d   :  { %1348 = vperm.xlu1 %2053, %v1294_v34   ;;  %v1292_v35 = vmul.f32 %v2148_v31, %v1200_v10  ;;  %v2157_v10 = vld [vmem:[%s3175_s0 + $0x70] sm:$0xff]  ;;  %v2158_v31 = vld [vmem:[%s3175_s0 + $0x78] sm:$0xff] }
 0x23f   :  { %1338 = vperm.xlu0 %2054, %v1292_v35  }
 0x240   :  { %v1208_v36 = vpop.permute.xlu1 %1207 }
 0x241   :  { %1353 = vperm.xlu1 %2053, %v1295_v8   ;;  %v1296_v52 = vmul.f32 %v2150_v55, %v1208_v36 }
 0x242   :  { %v1210_v16 = vpop.permute.xlu0 %1209 }
 0x243   :  { %v1297_v15 = vmul.f32 %v2151_v11, %v1210_v16  ;;  %1358 = vperm.xlu0 %2054, %v1296_v52   ;;  %v2160_v16 = vld [vmem:[%s3175_s0 + $0x88] sm:$0xff]  ;;  %v2161_v11 = vld [vmem:[%s3175_s0 + $0x90] sm:$0xff] }
 0x244   :  { %v1212_v47 = vpop.permute.xlu1 %1211 }
 0x245   :  { %1363 = vperm.xlu1 %2053, %v1297_v15   ;;  %v1298_v33 = vmul.f32 %v2152_v54, %v1212_v47 }
 0x246   :  { %v1214_v29 = vpop.permute.xlu0 %1213 }
 0x247   :  { %v1299_v38 = vmul.f32 %v2153_v1, %v1214_v29  ;;  %1368 = vperm.xlu0 %2054, %v1298_v33   ;;  %v2162_v29 = vld [vmem:[%s3175_s0 + $0x98] sm:$0xff] }
 0x248   :  { %v1216_v63 = vpop.permute.xlu1 %1215 }
 0x249   :  { %1373 = vperm.xlu1 %2053, %v1299_v38   ;;  %v1300_v48 = vmul.f32 %v2154_v19, %v1216_v63  ;;  %v2164_v38 = vld [vmem:[%s3175_s0 + $0xa8] sm:$0xff] }
 0x24a   :  { %v1218_v7 = vpop.permute.xlu0 %1217 }
 0x24b   :  { %v1301_v50 = vmul.f32 %v2155_v5, %v1218_v7  ;;  %1378 = vperm.xlu0 %2054, %v1300_v48   ;;  %v2166_v7 = vld [vmem:[%s3175_s0 + $0xb8] sm:$0xff]  ;;  %v2167_v5 = vld [vmem:[%s3175_s0 + $0xc0] sm:$0xff] }
 0x24c   :  { %v1220_v40 = vpop.permute.xlu1 %1219 }
 0x24d   :  { %1383 = vperm.xlu1 %2053, %v1301_v50   ;;  %v1302_v34 = vmul.f32 %v2156_v39, %v1220_v40 }
 0x24e   :  { %v1222_v25 = vpop.permute.xlu0 %1221 }
 0x24f   :  { %v1303_v17 = vmul.f32 %v2157_v10, %v1222_v25  ;;  %1388 = vperm.xlu0 %2054, %v1302_v34   ;;  %v2168_v25 = vld [vmem:[%s3175_s0 + $0xc8] sm:$0xff]  ;;  %v2169_v10 = vld [vmem:[%s3175_s0 + $0xd0] sm:$0xff] }
 0x250   :  { %v1224_v51 = vpop.permute.xlu1 %1223 }
 0x251   :  { %1393 = vperm.xlu1 %2053, %v1303_v17   ;;  %v1304_v35 = vmul.f32 %v2158_v31, %v1224_v51  ;;  %v2170_v31 = vld [vmem:[%s3175_s0 + $0xd8] sm:$0xff] }
 0x253   :  { %1398 = vperm.xlu0 %2054, %v1304_v35  }
 0x255   :  { %v1226_v24 = vpop.permute.xlu0 %1225 }
 0x256   :  { %v1305_v8 = vmul.f32 %v2159_v56, %v1226_v24  ;;  %v2171_v56 = vld [vmem:[%s3175_s0 + $0xe0] sm:$0xff] }
 0x257   :  { %v1228_v36 = vpop.permute.xlu1 %1227 }
 0x258   :  { %v1306_v55 = vmul.f32 %v2160_v16, %v1228_v36  ;;  %1403 = vperm.xlu1 %2053, %v1305_v8   ;;  %v2172_v16 = vld [vmem:[%s3175_s0 + $0xe8] sm:$0xff] }
 0x259   :  { %v1230_v52 = vpop.permute.xlu0 %1229 }
 0x25a   :  { %v1307_v15 = vmul.f32 %v2161_v11, %v1230_v52  ;;  %1408 = vperm.xlu0 %2054, %v1306_v55   ;;  %v2173_v11 = vld [vmem:[%s3175_s0 + $0xf0] sm:$0xff] }
 0x25b   :  { %v1232_v47 = vpop.permute.xlu1 %1231 }
 0x25c   :  { %v1308_v54 = vmul.f32 %v2162_v29, %v1232_v47  ;;  %1413 = vperm.xlu1 %2053, %v1307_v15   ;;  %v2174_v29 = vld [vmem:[%s3175_s0 + $0xf8] sm:$0xff] }
 0x25d   :  { %v1234_v33 = vpop.permute.xlu0 %1233 }
 0x25e   :  { %v1309_v44 = vmul.f32 %v2163_v26, %v1234_v33  ;;  %1418 = vperm.xlu0 %2054, %v1308_v54   ;;  %v527_v33 = vmul.f32 %v2608_v46, %v2387_v42 }
 0x25f   :  { %v1236_v1 = vpop.permute.xlu1 %1235 }
 0x260   :  { %v1310_v21 = vmul.f32 %v2164_v38, %v1236_v1  ;;  %1423 = vperm.xlu1 %2053, %v1309_v44   ;;  %v590_v26 = vrot.slane %v527_v33, 7  ;;  %v528_v44 = vmul.f32 %v2608_v46, %v2374_v28  ;;  %v526_v1 = vmul.f32 %v2608_v46, %v2378_v32 }
 0x261   :  { %v1238_v30 = vpop.permute.xlu0 %1237  ;;  %v530_v38 = vmul.f32 %v2608_v46, %v2408_v9  ;;  %v532_v32 = vmul.f32 %v2608_v46, %v2403_v3 }
 0x262   :  { %v1311_v63 = vmul.f32 %v2165_v45, %v1238_v30  ;;  %1428 = vperm.xlu0 %2054, %v1310_v21   ;;  %v529_v21 = vmul.f32 %v2608_v46, %v2382_v37  ;;  %v592_v30 = vsel %vm591_vm2, %v590_v26, %v526_v1  ;;  %v593_v45 = vrot.slane %v528_v44, 6 }
 0x263   :  { %v1240_v49 = vpop.permute.xlu1 %1239  ;;  %v533_v37 = vmul.f32 %v2608_v46, %v2411_v13  ;;  %v3001_v13 = vld [vmem:[%s3176_s1 + $0x89] ss:$0 sm:$0xff]  ;;  %v1551_v1 = vmul.f32 %v2359_v14, %v2359_v14 }
 0x264   :  { %v1312_v19 = vmul.f32 %v2166_v7, %v1240_v49  ;;  %1433 = vperm.xlu1 %2053, %v1311_v63   ;;  %v531_v63 = vmul.f32 %v2608_v46, %v2417_v20  ;;  %v595_v42 = vsel %vm594_vm3, %v593_v45, %v592_v30  ;;  %v599_v49 = vrot.slane %v530_v38, 4  ;;  %v3032_v45 = vld [vmem:[%s3176_s1 + $0x88] ss:$0 sm:$0xff] }
 0x265   :  { %v596_v7 = vrot.slane %v529_v21, 5 }
 0x266   :  { %v1242_v48 = vpop.permute.xlu0 %1241  ;;  %1438 = vperm.xlu0 %2054, %v1312_v19   ;;  %v602_v19 = vrot.slane %v531_v63, 3  ;;  %v1552_v63 = vmul.f32 %v2364_v22, %v2364_v22 }
 0x267   :  { %v1313_v50 = vmul.f32 %v2167_v5, %v1242_v48  ;;  %v598_v28 = vsel %vm597_vm4, %v596_v7, %v595_v42  ;;  %v605_v5 = vrot.slane %v532_v32, 2 }
 0x268   :  { %v1244_v40 = vpop.permute.xlu1 %1243  ;;  %v601_v9 = vsel %vm600_vm5, %v599_v49, %v598_v28 }
 0x269   :  { %v1314_v39 = vmul.f32 %v2168_v25, %v1244_v40  ;;  %1443 = vperm.xlu1 %2053, %v1313_v50   ;;  %v604_v48 = vsel %vm603_vm6, %v602_v19, %v601_v9  ;;  %v608_v50 = vrot.slane %v533_v37, 1  ;;  %v1583_v9 = vsub.f32 1.0, %v1551_v1 }
 0x26a   :  { %v1246_v34 = vpop.permute.xlu0 %1245  ;;  %v607_v20 = vsel %vm606_vm7, %v605_v5, %v604_v48  ;;  %v1553_v37 = vmul.f32 %v2394_v53, %v2394_v53 }
 0x26b   :  { %v1315_v17 = vmul.f32 %v2169_v10, %v1246_v34  ;;  %1448 = vperm.xlu0 %2054, %v1314_v39   ;;  %v610_v40 = vsel %vm609_vm8, %v608_v50, %v607_v20  ;;  %v1546_v34 = vmul.f32 %v2351_v0, %v2351_v0  ;;  %v1584_v20 = vsub.f32 1.0, %v1552_v63 }
 0x26c   :  { %v1248_v51 = vpop.permute.xlu1 %1247  ;;  %v1554_v50 = vmul.f32 %v2401_v2, %v2401_v2  ;;  %v1585_v53 = vsub.f32 1.0, %v1553_v37 }
 0x26d   :  { %v1316_v35 = vmul.f32 %v2170_v31, %v1248_v51  ;;  %1453 = vperm.xlu1 %2053, %v1315_v17  }
 0x26e   :  { %v1250_v24 = vpop.permute.xlu0 %1249 }
 0x26f   :  { %v1317_v8 = vmul.f32 %v2171_v56, %v1250_v24  ;;  %1458 = vperm.xlu0 %2054, %v1316_v35   ;;  %v1578_v35 = vsub.f32 1.0, %v1546_v34  ;;  %v1549_v56 = vmul.f32 %v2361_v18, %v2361_v18 }
 0x270   :  { %v1252_v36 = vpop.permute.xlu1 %1251 }
 0x271   :  { %v1318_v55 = vmul.f32 %v2172_v16, %v1252_v36  ;;  %1463 = vperm.xlu1 %2053, %v1317_v8  }
 0x272   :  { %v1254_v52 = vpop.permute.xlu0 %1253 }
 0x273   :  { %v1319_v15 = vmul.f32 %v2173_v11, %v1254_v52  ;;  %1468 = vperm.xlu0 %2054, %v1318_v55   ;;  %v1547_v11 = vmul.f32 %v2343_v58, %v2343_v58 }
 0x274   :  { %v1256_v47 = vpop.permute.xlu1 %1255 }
 0x275   :  { %v1320_v54 = vmul.f32 %v2174_v29, %v1256_v47  ;;  %1473 = vperm.xlu1 %2053, %v1319_v15   ;;  %v1548_v15 = vmul.f32 %v2348_v62, %v2348_v62  ;;  %v1579_v62 = vsub.f32 1.0, %v1547_v11 }
 0x277   :  { %1478 = vperm.xlu0 %2054, %v1320_v54   ;;  %v1580_v30 = vsub.f32 1.0, %v1548_v15 }
 0x296   :  { %659 = vadd.xlane.f32.xlu0 %v2654_v61  ;;  %v1545_v61 = vmul.f32 %v2345_v60, %v2345_v60  ;;  %v1550_v60 = vmul.f32 %v2372_v27, %v2372_v27  ;;  %v1581_v27 = vsub.f32 1.0, %v1549_v56 }
 0x298   :  { %v1577_v31 = vsub.f32 1.0, %v1545_v61  ;;  %v1582_v54 = vsub.f32 1.0, %v1550_v60 }
 0x299   :  { %657 = vadd.xlane.f32.xlu1 %v610_v40 }
 0x29a   :  { %661 = vadd.xlane.f32.xlu0 %v2693_v23 }
 0x29e   :  { %663 = vadd.xlane.f32.xlu0 %v2702_v57 }
 0x2b0   :  { %v1324_v3 = vpop.permute.xlu1 %1323 }
 0x2b1   :  { %v1481_v39 = vmul.f32 %v3001_v13, %v1324_v3 }
 0x2b3   :  { %v1513_v23 = vadd.f32 %v2608_v46, %v1481_v39 }
 0x2b4   :  { %v1344_v25 = vpop.permute.xlu0 %1343 }
 0x2b5   :  { %v1485_v57 = vmul.f32 %v3001_v13, %v1344_v25  ;;  %v1609_v36 = vmul.f32 %v1577_v31, %v1513_v23  ;;  %v3220_v31 = vld [vmem:[#allocation6_spill] sm:$0xff] }
 0x2b6   :  { %v1556_v2 = vmul.f32 %v3220_v31, %v3220_v31 }
 0x2b7   :  { %v1517_v16 = vadd.f32 %v2608_v46, %v1485_v57  ;;  %v1586_v57 = vsub.f32 1.0, %v1554_v50 }
 0x2b8   :  { %v1329_v10 = vpop.permute.xlu0 %1328  ;;  %v1334_v17 = vpop.permute.xlu1 %1333  ;;  %v1588_v15 = vsub.f32 1.0, %v1556_v2 }
 0x2b9   :  { %v1482_v51 = vmul.f32 %v3001_v13, %v1329_v10  ;;  %v1483_v0 = vmul.f32 %v3001_v13, %v1334_v17  ;;  %v1613_v58 = vmul.f32 %v1581_v27, %v1517_v16  ;;  %v3219_v10 = vld [vmem:[#allocation5_spill] sm:$0xff] }
 0x2ba   :  { %v1555_v17 = vmul.f32 %v3219_v10, %v3219_v10 }
 0x2bb   :  { %v1514_v24 = vadd.f32 %v2608_v46, %v1482_v51  ;;  %v1515_v33 = vadd.f32 %v2608_v46, %v1483_v0 }
 0x2bc   :  { %v1349_v8 = vpop.permute.xlu1 %1348  ;;  %v1587_v16 = vsub.f32 1.0, %v1555_v17 }
 0x2bd   :  { %v1610_v55 = vmul.f32 %v1578_v35, %v1514_v24  ;;  %v1486_v52 = vmul.f32 %v3001_v13, %v1349_v8  ;;  %v1611_v14 = vmul.f32 %v1579_v62, %v1515_v33 }
 0x2be   :  { %v1339_v47 = vpop.permute.xlu0 %1338 }
 0x2bf   :  { %v1518_v18 = vadd.f32 %v2608_v46, %v1486_v52  ;;  %v1641_v29 = vpack.c.bf16 %v1610_v55, %v1609_v36  ;;  %v1484_v26 = vmul.f32 %v3001_v13, %v1339_v47  ;;  %v3221_v55 = vld [vmem:[#allocation8_spill] sm:$0xff]  ;;  %v3222_v47 = vld [vmem:[#allocation10_spill] sm:$0xff] }
 0x2c0   :  { %v1354_v44 = vpop.permute.xlu1 %1353  ;;  %v1557_v52 = vmul.f32 %v3221_v55, %v3221_v55 }
 0x2c1   :  { %v1487_v38 = vmul.f32 %v3001_v13, %v1354_v44  ;;  %1998 = vmatprep.mubr.bf16.mxu0 %v1641_v29  ;;  %v1614_v21 = vmul.f32 %v1582_v54, %v1518_v18  ;;  %v1516_v46 = vadd.f32 %v3032_v45, %v1484_v26  ;;  %v1558_v29 = vmul.f32 %v3222_v47, %v3222_v47 }
 0x2c2   :  { %v1359_v42 = vpop.permute.xlu0 %1358  ;;  %v1589_v63 = vsub.f32 1.0, %v1557_v52 }
 0x2c3   :  { %v1643_v49 = vpack.c.bf16 %v1614_v21, %v1613_v58  ;;  %v1612_v7 = vmul.f32 %v1580_v30, %v1516_v46  ;;  %v1519_v28 = vadd.f32 %v3032_v45, %v1487_v38  ;;  %v1488_v19 = vmul.f32 %v3001_v13, %v1359_v42  ;;  %v3223_v58 = vld [vmem:[#allocation7_spill] sm:$0xff]  ;;  %v3224_v30 = vld [vmem:[#allocation9_spill] sm:$0xff] }
 0x2c4   :  { %v1364_v32 = vpop.permute.xlu1 %1363  ;;  %v1559_v21 = vmul.f32 %v3223_v58, %v3223_v58  ;;  %v1560_v46 = vmul.f32 %v3224_v30, %v3224_v30  ;;  %v1590_v42 = vsub.f32 1.0, %v1558_v29  ;;  %v3230_v29 = vld [vmem:[#allocation18_spill] sm:$0xff] }
 0x2c5   :  { %v1489_v48 = vmul.f32 %v3001_v13, %v1364_v32  ;;  %2002 = vmatprep.mubr.bf16.mxu1 %v1643_v49  ;;  %v1642_v5 = vpack.c.bf16 %v1612_v7, %v1611_v14  ;;  %v1520_v22 = vadd.f32 %v3032_v45, %v1488_v19  ;;  %v1615_v3 = vmul.f32 %v1583_v9, %v1519_v28 }
 0x2c6   :  { %v1369_v40 = vpop.permute.xlu0 %1368  ;;  %v1591_v37 = vsub.f32 1.0, %v1559_v21 }
 0x2c7   :  { %v1616_v25 = vmul.f32 %v1584_v20, %v1520_v22  ;;  %v1521_v39 = vadd.f32 %v3032_v45, %v1489_v48  ;;  %v1490_v61 = vmul.f32 %v3001_v13, %v1369_v40  ;;  %1999 = vmatmul.mubr.bf16.vlgmr.msra.gmra.mrb[32].mxu0 %v1642_v5  ;;  %v1592_v48 = vsub.f32 1.0, %v1560_v46  ;;  %v3225_v22 = vld [vmem:[#allocation12_spill] sm:$0xff]  ;;  %v3231_v46 = vld [vmem:[#allocation15_spill] sm:$0xff] }
 0x2c8   :  { %v1374_v34 = vpop.permute.xlu1 %1373  ;;  %v1561_v50 = vmul.f32 %v3225_v22, %v3225_v22  ;;  %v3233_v22 = vld [vmem:[#allocation20_spill] sm:$0xff] }
 0x2c9   :  { %v1491_v23 = vmul.f32 %v3001_v13, %v1374_v34  ;;  %v1522_v51 = vadd.f32 %v3032_v45, %v1490_v61  ;;  %v1644_v35 = vpack.c.bf16 %v1616_v25, %v1615_v3  ;;  %v1617_v56 = vmul.f32 %v1585_v53, %v1521_v39  ;;  %v3226_v61 = vld [vmem:[#allocation14_spill] sm:$0xff] }
 0x2ca   :  { %v1379_v24 = vpop.permute.xlu0 %1378  ;;  %v1562_v34 = vmul.f32 %v3226_v61, %v3226_v61 }
 0x2cb   :  { %v1618_v60 = vmul.f32 %v1586_v57, %v1522_v51  ;;  %v1523_v0 = vadd.f32 %v3032_v45, %v1491_v23  ;;  %v1492_v8 = vmul.f32 %v3001_v13, %v1379_v24  ;;  %2003 = vmatmul.mubr.bf16.vlgmr.msra.gmra.mrb[0].mxu1 %v1644_v35  ;;  %v1593_v57 = vsub.f32 1.0, %v1561_v50  ;;  %v3227_v51 = vld [vmem:[#allocation11_spill] sm:$0xff] }
 0x2cc   :  { %v1384_v36 = vpop.permute.xlu1 %1383  ;;  %v1563_v31 = vmul.f32 %v3227_v51, %v3227_v51  ;;  %v1594_v35 = vsub.f32 1.0, %v1562_v34  ;;  %v1569_v50 = vmul.f32 %v3233_v22, %v3233_v22 }
 0x2cd   :  { %v1493_v11 = vmul.f32 %v3001_v13, %v1384_v36  ;;  %v1524_v18 = vadd.f32 %v3032_v45, %v1492_v8  ;;  %v1645_v27 = vpack.c.bf16 %v1618_v60, %v1617_v56  ;;  %v1619_v33 = vmul.f32 %v1587_v16, %v1523_v0  ;;  %v3228_v60 = vld [vmem:[#allocation13_spill] sm:$0xff] }
 0x2ce   :  { %v1389_v54 = vpop.permute.xlu0 %1388  ;;  %v1564_v0 = vmul.f32 %v3228_v60, %v3228_v60 }
 0x2cf   :  { %v1620_v26 = vmul.f32 %v1588_v15, %v1524_v18  ;;  %v1525_v44 = vadd.f32 %v3032_v45, %v1493_v11  ;;  %v1494_v1 = vmul.f32 %v3001_v13, %v1389_v54  ;;  %2006 = vmatprep.mubr.bf16.mxu1 %v1645_v27  ;;  %v1595_v11 = vsub.f32 1.0, %v1563_v31  ;;  %v3229_v15 = vld [vmem:[#allocation16_spill] sm:$0xff] }
 0x2d0   :  { %v1394_v38 = vpop.permute.xlu1 %1393  ;;  %v1565_v18 = vmul.f32 %v3229_v15, %v3229_v15  ;;  %v1566_v27 = vmul.f32 %v3230_v29, %v3230_v29  ;;  %v1596_v54 = vsub.f32 1.0, %v1564_v0 }
 0x2d1   :  { %v1495_v62 = vmul.f32 %v3001_v13, %v1394_v38  ;;  %v1526_v49 = vadd.f32 %v3032_v45, %v1494_v1  ;;  %v1646_v14 = vpack.c.bf16 %v1620_v26, %v1619_v33  ;;  %v1621_v28 = vmul.f32 %v1589_v63, %v1525_v44 }
 0x2d2   :  { %v1399_v7 = vpop.permute.xlu0 %1398  ;;  %v1597_v30 = vsub.f32 1.0, %v1565_v18  ;;  %v1567_v63 = vmul.f32 %v3231_v46, %v3231_v46 }
 0x2d3   :  { %v1622_v19 = vmul.f32 %v1590_v42, %v1526_v49  ;;  %v1527_v32 = vadd.f32 %v3032_v45, %v1495_v62  ;;  %v1496_v9 = vmul.f32 %v3001_v13, %v1399_v7  ;;  %2007 = vmatmul.mubr.bf16.gmra.mrb[4].mxu1 %v1646_v14  ;;  %v3232_v49 = vld [vmem:[#allocation17_spill] sm:$0xff]  ;;  %v1598_v7 = vsub.f32 1.0, %v1566_v27 }
 0x2d4   :  { %v1568_v14 = vmul.f32 %v3232_v49, %v3232_v49  ;;  %v1573_v27 = vmul.f32 %v2549_v12, %v2549_v12  ;;  %v3237_v12 = vld [vmem:[#allocation23_spill] sm:$0xff] }
 0x2d5   :  { %v1528_v5 = vadd.f32 %v3032_v45, %v1496_v9  ;;  %v1647_v20 = vpack.c.bf16 %v1622_v19, %v1621_v28  ;;  %v1623_v3 = vmul.f32 %v1591_v37, %v1527_v32 }
 0x2d7   :  { %v1404_v40 = vpop.permute.xlu1 %1403  ;;  %v1624_v25 = vmul.f32 %v1592_v48, %v1528_v5  ;;  %2010 = vmatprep.mubr.bf16.mxu1 %v1647_v20 }
 0x2d8   :  { %v1497_v39 = vmul.f32 %v3001_v13, %v1404_v40  ;;  %v1599_v40 = vsub.f32 1.0, %v1567_v63  ;;  %v1605_v63 = vsub.f32 1.0, %v1573_v27 }
 0x2d9   :  { %v1409_v53 = vpop.permute.xlu0 %1408  ;;  %v1648_v23 = vpack.c.bf16 %v1624_v25, %v1623_v3  ;;  %v1600_v3 = vsub.f32 1.0, %v1568_v14 }
 0x2da   :  { %v1529_v10 = vadd.f32 %v3032_v45, %v1497_v39  ;;  %v1498_v17 = vmul.f32 %v3001_v13, %v1409_v53  ;;  %v3234_v53 = vld [vmem:[#allocation22_spill] sm:$0xff] }
 0x2db   :  { %v1414_v2 = vpop.permute.xlu1 %1413  ;;  %2011 = vmatmul.mubr.bf16.gmra.mrb[8].mxu1 %v1648_v23 }
 0x2dc   :  { %v1530_v24 = vadd.f32 %v3032_v45, %v1498_v17  ;;  %v1499_v56 = vmul.f32 %v3001_v13, %v1414_v2  ;;  %v1625_v36 = vmul.f32 %v1593_v57, %v1529_v10  ;;  %v1570_v10 = vmul.f32 %v3234_v53, %v3234_v53  ;;  %v2177_v53 = vld [vmem:[%s3176_s1 + $0x8a] ss:$0 sm:$0xff] }
 0x2dd   :  { %v1419_v8 = vpop.permute.xlu0 %1418  ;;  %v1601_v2 = vsub.f32 1.0, %v1569_v50 }
 0x2de   :  { %v1626_v16 = vmul.f32 %v1594_v35, %v1530_v24  ;;  %v1531_v55 = vadd.f32 %v3032_v45, %v1499_v56  ;;  %v1500_v52 = vmul.f32 %v3001_v13, %v1419_v8  ;;  %v3235_v35 = vld [vmem:[#allocation19_spill] sm:$0xff]  ;;  %v1602_v0 = vsub.f32 1.0, %v1570_v10 }
 0x2df   :  { %v1424_v47 = vpop.permute.xlu1 %1423  ;;  %v1571_v24 = vmul.f32 %v3235_v35, %v3235_v35 }
 0x2e0   :  { %v1532_v33 = vadd.f32 %v3032_v45, %v1500_v52  ;;  %v1501_v26 = vmul.f32 %v3001_v13, %v1424_v47  ;;  %v1649_v44 = vpack.c.bf16 %v1626_v16, %v1625_v36  ;;  %v1627_v38 = vmul.f32 %v1595_v11, %v1531_v55  ;;  %v3236_v16 = vld [vmem:[#allocation21_spill] sm:$0xff] }
 0x2e1   :  { %v1429_v1 = vpop.permute.xlu0 %1428  ;;  %v1572_v55 = vmul.f32 %v3236_v16, %v3236_v16  ;;  %v1603_v29 = vsub.f32 1.0, %v1571_v24 }
 0x2e2   :  { %v1628_v58 = vmul.f32 %v1596_v54, %v1532_v33  ;;  %v1533_v21 = vadd.f32 %v3032_v45, %v1501_v26  ;;  %v1502_v62 = vmul.f32 %v3001_v13, %v1429_v1  ;;  %2014 = vmatprep.mubr.bf16.mxu1 %v1649_v44  ;;  %v1574_v33 = vmul.f32 %v2558_v43, %v2558_v43  ;;  %v3238_v43 = vld [vmem:[#allocation24_spill] sm:$0xff] }
 0x2e3   :  { %v1434_v42 = vpop.permute.xlu1 %1433  ;;  %v1604_v26 = vsub.f32 1.0, %v1572_v55  ;;  %v1576_v14 = vmul.f32 %v3238_v43, %v3238_v43 }
 0x2e4   :  { %v1534_v28 = vadd.f32 %v3032_v45, %v1502_v62  ;;  %v1503_v19 = vmul.f32 %v3001_v13, %v1434_v42  ;;  %v1650_v32 = vpack.c.bf16 %v1628_v58, %v1627_v38  ;;  %v1629_v37 = vmul.f32 %v1597_v30, %v1533_v21 }
 0x2e5   :  { %v1439_v9 = vpop.permute.xlu0 %1438  ;;  %v1575_v42 = vmul.f32 %v3237_v12, %v3237_v12  ;;  %v1608_v50 = vsub.f32 1.0, %v1576_v14 }
 0x2e6   :  { %v1630_v48 = vmul.f32 %v1598_v7, %v1534_v28  ;;  %v1535_v5 = vadd.f32 %v3032_v45, %v1503_v19  ;;  %v1504_v20 = vmul.f32 %v3001_v13, %v1439_v9  ;;  %2015 = vmatmul.mubr.bf16.gmra.mrb[12].mxu1 %v1650_v32  ;;  %v1606_v7 = vsub.f32 1.0, %v1574_v33 }
 0x2e7   :  { %v1607_v22 = vsub.f32 1.0, %v1575_v42 }
 0x2e8   :  { %v1536_v25 = vadd.f32 %v3032_v45, %v1504_v20  ;;  %v1444_v39 = vpop.permute.xlu1 %1443  ;;  %v1651_v61 = vpack.c.bf16 %v1630_v48, %v1629_v37  ;;  %v1631_v17 = vmul.f32 %v1599_v40, %v1535_v5 }
 0x2e9   :  { %v1505_v34 = vmul.f32 %v3001_v13, %v1444_v39 }
 0x2ea   :  { %v1632_v23 = vmul.f32 %v1600_v3, %v1536_v25  ;;  %v1449_v57 = vpop.permute.xlu0 %1448  ;;  %2018 = vmatprep.mubr.bf16.mxu1 %v1651_v61 }
 0x2eb   :  { %v1537_v51 = vadd.f32 %v3032_v45, %v1505_v34  ;;  %v1506_v31 = vmul.f32 %v3001_v13, %v1449_v57 }
 0x2ec   :  { %v1454_v56 = vpop.permute.xlu1 %1453  ;;  %v1652_v60 = vpack.c.bf16 %v1632_v23, %v1631_v17 }
 0x2ed   :  { %v1538_v8 = vadd.f32 %v3032_v45, %v1506_v31  ;;  %v1507_v36 = vmul.f32 %v3001_v13, %v1454_v56  ;;  %v1633_v11 = vmul.f32 %v1601_v2, %v1537_v51 }
 0x2ee   :  { %v1459_v52 = vpop.permute.xlu0 %1458  ;;  %2019 = vmatmul.mubr.bf16.gmra.mrb[16].mxu1 %v1652_v60 }
 0x2ef   :  { %v1634_v15 = vmul.f32 %v1602_v0, %v1538_v8  ;;  %v1539_v18 = vadd.f32 %v3032_v45, %v1507_v36  ;;  %v1508_v47 = vmul.f32 %v3001_v13, %v1459_v52 }
 0x2f0   :  { %v1464_v54 = vpop.permute.xlu1 %1463 }
 0x2f1   :  { %v1540_v44 = vadd.f32 %v3032_v45, %v1508_v47  ;;  %v1509_v1 = vmul.f32 %v3001_v13, %v1464_v54  ;;  %v1653_v38 = vpack.c.bf16 %v1634_v15, %v1633_v11  ;;  %v1635_v21 = vmul.f32 %v1603_v29, %v1539_v18 }
 0x2f2   :  { %v1469_v58 = vpop.permute.xlu0 %1468 }
 0x2f3   :  { %v1636_v62 = vmul.f32 %v1604_v26, %v1540_v44  ;;  %v1541_v30 = vadd.f32 %v3032_v45, %v1509_v1  ;;  %v1510_v46 = vmul.f32 %v3001_v13, %v1469_v58  ;;  %2022 = vmatprep.mubr.bf16.mxu1 %v1653_v38 }
 0x2f4   :  { %v1474_v49 = vpop.permute.xlu1 %1473 }
 0x2f5   :  { %v1542_v28 = vadd.f32 %v3032_v45, %v1510_v46  ;;  %v1511_v19 = vmul.f32 %v3001_v13, %v1474_v49  ;;  %v1654_v32 = vpack.c.bf16 %v1636_v62, %v1635_v21  ;;  %v1637_v37 = vmul.f32 %v1605_v63, %v1541_v30 }
 0x2f6   :  { %v1479_v9 = vpop.permute.xlu0 %1478 }
 0x2f7   :  { %v1638_v48 = vmul.f32 %v1606_v7, %v1542_v28  ;;  %v1543_v5 = vadd.f32 %v3032_v45, %v1511_v19  ;;  %v1512_v20 = vmul.f32 %v3001_v13, %v1479_v9  ;;  %2023 = vmatmul.mubr.bf16.gmra.mrb[20].mxu1 %v1654_v32 }
 0x2f9   :  { %v1544_v40 = vadd.f32 %v3032_v45, %v1512_v20  ;;  %v1655_v3 = vpack.c.bf16 %v1638_v48, %v1637_v37  ;;  %v1639_v25 = vmul.f32 %v1607_v22, %v1543_v5 }
 0x2fb   :  { %v1640_v39 = vmul.f32 %v1608_v50, %v1544_v40  ;;  %2026 = vmatprep.mubr.bf16.mxu1 %v1655_v3 }
 0x2fd   :  { %v1656_v61 = vpack.c.bf16 %v1640_v39, %v1639_v25 }
 0x2ff   :  { %2027 = vmatmul.mubr.bf16.gmra.mrb[24].mxu1 %v1656_v61 }
 0x323   :  { %v660_v34 = vpop.xlane.xlu0 %659 }
 0x324   :  { %v670_v10 = vadd.f32 %v2177_v53, %v660_v34 }
 0x326   :  { %v1860_v13 = vsel %vm1858_vm13, %v670_v10, %v2745_v6  ;;  %v658_v17 = vpop.xlane.xlu1 %657 }
 0x327   :  { %1865 = vst.msk [vmem:[%s3178_s3 + $0x8] sm:$0xff] %vm1863_vm14, %v1860_v13  ;;  %v669_v45 = vadd.f32 %v2177_v53, %v658_v17  ;;  %v662_v23 = vpop.xlane.xlu0 %661 }
 0x328   :  { %v671_v57 = vadd.f32 %v2177_v53, %v662_v23 }
 0x329   :  { %v1859_v51 = vsel %vm1858_vm13, %v669_v45, %v2716_v4 }
 0x32a   :  { %1864 = vst.msk [vmem:[%s3178_s3] sm:$0xff] %vm1863_vm14, %v1859_v51  ;;  %v1861_v6 = vsel %vm1858_vm13, %v671_v57, %v2776_v59 }
 0x32b   :  { %1866 = vst.msk [vmem:[%s3178_s3 + $0x10] sm:$0xff] %vm1863_vm14, %v1861_v6  ;;  %v664_v31 = vpop.xlane.xlu0 %663 }
 0x32c   :  { %v672_v2 = vadd.f32 %v2177_v53, %v664_v31 }
 0x32e   :  { %v1862_v35 = vsel %vm1858_vm13, %v672_v2, %v2801_v41 }
 0x32f   :  { %1867 = vst.msk [vmem:[%s3178_s3 + $0x18] sm:$0xff] %vm1863_vm14, %v1862_v35  ;;  %s2205_s3 = smov [#allocation2]  }
 0x330   :  { %s1873_s4 = sshll.u32 %s2205_s3, 4  ;;  %s1874_s4 = int_to_ptr.vmem [resolvable:$true] %s1873_s4 }
 0x331   :  { %s2178_s5 = scalar_lea.vmem %s1874_s4, 4096  ;;  %p2183_p1 = scmp.lt.s32.totalorder %s1874_s4, %s1874_s4 }
 0x332   :  { %p2179_p0 = scmp.ne.s32.totalorder %s1874_s4, %s2178_s5  ;;  %p2184_p2 = scmp.lt.s32.totalorder %s2178_s5, %s2178_s5 }
 0x334   :  { %p2185_p3 = por %p2184_p2, %p2183_p1 }
 0x336   :  { %p2186_p4 = pnand %p2185_p3, %p2179_p0 }
 0x39a   :  { %v2000_v4 = vpop.f32.mrb[32].mxu0 }
 0x39b   :  { %1828 = vst [vmem:[#allocation2 + $0x10] sm:$0xff] %v2000_v4  ;;  %v1699_v24 = vpop.f32.mrb[33].mxu0 }
 0x39c   :  { %1826 = vst [vmem:[#allocation2] sm:$0xff] %v1699_v24  ;;  %v2001_v59 = vpop.f32.mrb[34].mxu0 }
 0x39d   :  { %1829 = vst [vmem:[#allocation2 + $0x18] sm:$0xff] %v2001_v59  ;;  %v1702_v56 = vpop.f32.mrb[35].mxu0 }
 0x39e   :  { %1827 = vst [vmem:[#allocation2 + $0x8] sm:$0xff] %v1702_v56  ;;  %v2004_v60 = vpop.f32.mrb[0].mxu1 }
 0x39f   :  { %1832 = vst [vmem:[#allocation2 + $0x30] sm:$0xff] %v2004_v60  ;;  %v1715_v0 = vpop.f32.mrb[1].mxu1 }
 0x3a0   :  { %1830 = vst [vmem:[#allocation2 + $0x20] sm:$0xff] %v1715_v0  ;;  %v2005_v8 = vpop.f32.mrb[2].mxu1 }
 0x3a1   :  { %1833 = vst [vmem:[#allocation2 + $0x38] sm:$0xff] %v2005_v8  ;;  %v1718_v41 = vpop.f32.mrb[3].mxu1 }
 0x3a2   :  { %1831 = vst [vmem:[#allocation2 + $0x28] sm:$0xff] %v1718_v41 }
 0x3a6   :  { %v2008_v36 = vpop.f32.mrb[4].mxu1 }
 0x3a7   :  { %1836 = vst [vmem:[#allocation2 + $0x50] sm:$0xff] %v2008_v36  ;;  %v1731_v16 = vpop.f32.mrb[5].mxu1 }
 0x3a8   :  { %1834 = vst [vmem:[#allocation2 + $0x40] sm:$0xff] %v1731_v16  ;;  %v2009_v55 = vpop.f32.mrb[6].mxu1 }
 0x3a9   :  { %1837 = vst [vmem:[#allocation2 + $0x58] sm:$0xff] %v2009_v55  ;;  %v1734_v52 = vpop.f32.mrb[7].mxu1 }
 0x3aa   :  { %1835 = vst [vmem:[#allocation2 + $0x48] sm:$0xff] %v1734_v52 }
 0x3ae   :  { %v2012_v11 = vpop.f32.mrb[8].mxu1 }
 0x3af   :  { %1840 = vst [vmem:[#allocation2 + $0x70] sm:$0xff] %v2012_v11  ;;  %v1747_v15 = vpop.f32.mrb[9].mxu1 }
 0x3b0   :  { %1838 = vst [vmem:[#allocation2 + $0x60] sm:$0xff] %v1747_v15  ;;  %v2013_v18 = vpop.f32.mrb[10].mxu1 }
 0x3b1   :  { %1841 = vst [vmem:[#allocation2 + $0x78] sm:$0xff] %v2013_v18  ;;  %v1750_v47 = vpop.f32.mrb[11].mxu1 }
 0x3b2   :  { %1839 = vst [vmem:[#allocation2 + $0x68] sm:$0xff] %v1750_v47 }
 0x3b9   :  { %v2016_v29 = vpop.f32.mrb[12].mxu1 }
 0x3ba   :  { %1844 = vst [vmem:[#allocation2 + $0x90] sm:$0xff] %v2016_v29  ;;  %v1763_v27 = vpop.f32.mrb[13].mxu1 }
 0x3bb   :  { %1842 = vst [vmem:[#allocation2 + $0x80] sm:$0xff] %v1763_v27  ;;  %v2017_v54 = vpop.f32.mrb[14].mxu1 }
 0x3bc   :  { %1845 = vst [vmem:[#allocation2 + $0x98] sm:$0xff] %v2017_v54  ;;  %v1766_v33 = vpop.f32.mrb[15].mxu1 }
 0x3bd   :  { %1843 = vst [vmem:[#allocation2 + $0x88] sm:$0xff] %v1766_v33 }
 0x3c1   :  { %v2020_v26 = vpop.f32.mrb[16].mxu1 }
 0x3c2   :  { %1848 = vst [vmem:[#allocation2 + $0xb0] sm:$0xff] %v2020_v26  ;;  %v1779_v44 = vpop.f32.mrb[17].mxu1 }
 0x3c3   :  { %1846 = vst [vmem:[#allocation2 + $0xa0] sm:$0xff] %v1779_v44  ;;  %v2021_v1 = vpop.f32.mrb[18].mxu1 }
 0x3c4   :  { %1849 = vst [vmem:[#allocation2 + $0xb8] sm:$0xff] %v2021_v1  ;;  %v1782_v38 = vpop.f32.mrb[19].mxu1 }
 0x3c5   :  { %1847 = vst [vmem:[#allocation2 + $0xa8] sm:$0xff] %v1782_v38 }
 0x3ca   :  { %v2024_v58 = vpop.f32.mrb[20].mxu1 }
 0x3cb   :  { %1852 = vst [vmem:[#allocation2 + $0xd0] sm:$0xff] %v2024_v58  ;;  %v1795_v21 = vpop.f32.mrb[21].mxu1 }
 0x3cc   :  { %1850 = vst [vmem:[#allocation2 + $0xc0] sm:$0xff] %v1795_v21  ;;  %v2025_v62 = vpop.f32.mrb[22].mxu1 }
 0x3cd   :  { %1853 = vst [vmem:[#allocation2 + $0xd8] sm:$0xff] %v2025_v62  ;;  %v1798_v30 = vpop.f32.mrb[23].mxu1 }
 0x3ce   :  { %1851 = vst [vmem:[#allocation2 + $0xc8] sm:$0xff] %v1798_v30 }
 0x3d2   :  { %v2028_v46 = vpop.f32.mrb[24].mxu1 }
 0x3d3   :  { %1856 = vst [vmem:[#allocation2 + $0xf0] sm:$0xff] %v2028_v46  ;;  %v1811_v63 = vpop.f32.mrb[25].mxu1 }
 0x3d4   :  { %1854 = vst [vmem:[#allocation2 + $0xe0] sm:$0xff] %v1811_v63  ;;  %v2029_v12 = vpop.f32.mrb[26].mxu1 }
 0x3d5   :  { %1857 = vst [vmem:[#allocation2 + $0xf8] sm:$0xff] %v2029_v12  ;;  %v1814_v42 = vpop.f32.mrb[27].mxu1 }
 0x3d6   :  { %1855 = vst [vmem:[#allocation2 + $0xe8] sm:$0xff] %v1814_v42 }
 0x3d7   :  { %2189 = shalt.err (!%p2186_p4)
}
 0x3d8   :  { %s2190_s8 = scalar_lea.hbm %s3177_s2, 4096 }
 0x3d9   :  { %p2191_p5 = scmp.ne.s32.totalorder %s3177_s2, %s2190_s8  ;;  %p2194_p6 = scmp.lt.u32.totalorder %s2190_s8, %s3177_s2 }
 0x3db   :  { %p2196_p7 = pnand %p2194_p6, %p2191_p5 }
 0x3dd   :  { %2199 = shalt.err (!%p2196_p7)
}
 0x3de   :  { %s2206_s13 = smov 128   ;;  %s2207_s14 = smov 8  }
 0x3df   :  { %1879 = dma.vmem_to_hbm [thread:$0]  %s1874_s4, 4096, %s3177_s2, [#allocation3], %s2206_s13, %s2206_s13, %s2207_s14  }
 0x3e0   :  { %2200 = dma.done.wait [#allocation3], 4096  }
 0x3e1   :  { %2201 = vsyncadd [#allocation3], 4294963200 }
 0x3e2   :  { %1887 = vsyncpa [#allocation3], 1 }

</bundles_post_ra>
